<compile_context>
chip_gen: v6e
topology: v6e:2x2x1
jax: 0.10.0
libtpu: 0.0.40
codegen_flags: <defaults>
</compile_context>

<pallas_src>
import functools

import numpy as np

import jax
import jax.numpy as jnp
from jax.experimental import pallas as pl
from jax.experimental.pallas import tpu as pltpu


# ---------------------------------------------------------------------------
# Small helpers
# ---------------------------------------------------------------------------

def _roundup(x: int, m: int) -> int:
    return ((x + m - 1) // m) * m


def _vmem_capacity_bytes() -> int:
    try:
        return int(pltpu.get_tpu_info().vmem_capacity_bytes)
    except Exception:
        pass
    try:
        kind = jax.devices()[0].device_kind.lower()
    except Exception:
        kind = ""
    if "v5" in kind or "v6" in kind:
        return 128 * 1024 * 1024
    return 64 * 1024 * 1024  # v7x per-core VMEM / conservative default


def _tile_candidates(oh: int, cap: int):
    """Output-row tile sizes dividing oh, preferring multiples of 128 (v5e MXU),
    then 16, then 8; each group largest-first.  Falls back to one full tile."""
    cap = max(8, min(cap, oh))
    cands = []
    for align in (128, 16, 8):
        t = cap - cap % align
        while t >= align:
            if oh % t == 0 and t not in cands:
                cands.append(t)
            t -= align
    if not cands:
        cands = [oh]  # awkward OH (no divisor >= 8): single full-height tile
    return cands


def _const_block_spec(shape, index_map, single_buffer: bool):
    # Block index never changes -> second pipeline buffer is pure VMEM waste.
    if single_buffer:
        return pl.BlockSpec(shape, index_map, pipeline_mode=pl.Buffered(1))
    return pl.BlockSpec(shape, index_map)


# ---------------------------------------------------------------------------
# Interpolation weights (host side, numpy, cached per shape)
# ---------------------------------------------------------------------------

@functools.lru_cache(maxsize=64)
def _bilinear_weight_matrix_np(in_size: int, out_size: int) -> np.ndarray:
    """W (out_size, in_size): y = W @ x resamples a 1-D signal with PyTorch
    bilinear / align_corners=False / antialias=False semantics."""
    scale = in_size / out_size
    dst = np.arange(out_size, dtype=np.float64)
    src = np.maximum((dst + 0.5) * scale - 0.5, 0.0)  # PyTorch clamps at 0
    x0 = np.floor(src).astype(np.int64)
    frac = (src - x0).astype(np.float32)
    x1 = np.minimum(x0 + 1, in_size - 1)
    w = np.zeros((out_size, in_size), dtype=np.float32)
    rows = np.arange(out_size)
    np.add.at(w, (rows, x0), 1.0 - frac)
    np.add.at(w, (rows, x1), frac)
    return w


@functools.lru_cache(maxsize=64)
def _row_weights_bf16(h: int, oh: int):
    return jnp.asarray(_bilinear_weight_matrix_np(h, oh), dtype=jnp.bfloat16)


@functools.lru_cache(maxsize=64)
def _col_weights_t_bf16(w: int, ow: int):
    # Pre-transposed so the kernel's RHS is already (W, OW).
    return jnp.asarray(_bilinear_weight_matrix_np(w, ow).T, dtype=jnp.bfloat16)


@functools.lru_cache(maxsize=64)
def _banded_row_weights(h: int, oh: int, tm: int):
    """Per-output-row-tile banded row weights.

    Returns (starts int32 (nt,), whb bf16 (nt, tm, bh), bh) such that
    Wh[j*tm + m, starts[j]:starts[j]+bh] == whb[j, m, :] and every source row
    needed by tile j lies in [starts[j], starts[j]+bh)."""
    wh = _bilinear_weight_matrix_np(h, oh)
    nt = oh // tm
    scale = h / oh
    dst = np.arange(oh, dtype=np.float64)
    src = np.maximum((dst + 0.5) * scale - 0.5, 0.0)
    x0 = np.floor(src).astype(np.int64)
    x1 = np.minimum(x0 + 1, h - 1)
    # src is nondecreasing -> band is [x0[first row], x1[last row]] per tile.
    starts = np.array([(x0[j * tm] // 8) * 8 for j in range(nt)], dtype=np.int64)
    ends = np.array([x1[(j + 1) * tm - 1] for j in range(nt)], dtype=np.int64)
    bh = int((ends - starts).max()) + 1
    bh = min(h, _roundup(bh, 8))
    starts = np.minimum(starts, h - bh)
    whb = np.zeros((nt, tm, bh), dtype=np.float32)
    for j in range(nt):
        whb[j] = wh[j * tm:(j + 1) * tm, starts[j]:starts[j] + bh]
    return (jnp.asarray(starts, dtype=jnp.int32),
            jnp.asarray(whb, dtype=jnp.bfloat16),
            bh)


# ---------------------------------------------------------------------------
# Kernels
# ---------------------------------------------------------------------------

def _resize_resident_kernel(x_ref, wh_ref, wwt_ref, o_ref):
    # x_ref:   (1, H, W)   current channel (f32, cast to bf16 per block)
    # wh_ref:  (Tm, H)     row-interp tile (bf16)
    # wwt_ref: (W, OW)     col-interp, pre-transposed (bf16)
    # o_ref:   (1, Tm, OW) output tile
    x = x_ref[0].astype(jnp.bfloat16)
    rows = jnp.dot(wh_ref[...], x, preferred_element_type=jnp.float32)     # (Tm, W)
    out = jnp.dot(rows.astype(jnp.bfloat16), wwt_ref[...],
                  preferred_element_type=jnp.float32)                      # (Tm, OW)
    o_ref[0] = out.astype(o_ref.dtype)


def _resize_banded_kernel(starts_ref, x_hbm_ref, whb_ref, wwt_ref, o_ref,
                          band_ref, sem_ref):
    # starts_ref: (nt,) int32 in SMEM (scalar prefetch) -- band start row / tile
    # x_hbm_ref:  (C, H, W) f32 in HBM (memory_space=pl.ANY)
    # whb_ref:    (1, Tm, BH) bf16 banded row weights for this tile
    # wwt_ref:    (W, OW) bf16
    # o_ref:      (1, Tm, OW)
    # band_ref:   (BH, W) f32 VMEM scratch; sem_ref: (1,) DMA semaphores
    j = pl.program_id(0)   # output-row tile
    ci = pl.program_id(1)  # channel
    bh = band_ref.shape[0]
    start = starts_ref[j]
    cp = pltpu.make_async_copy(x_hbm_ref.at[ci, pl.ds(start, bh), :],
                               band_ref, sem_ref.at[0])
    cp.start()
    cp.wait()
    band = band_ref[...].astype(jnp.bfloat16)                              # (BH, W)
    rows = jnp.dot(whb_ref[0], band, preferred_element_type=jnp.float32)   # (Tm, W)
    out = jnp.dot(rows.astype(jnp.bfloat16), wwt_ref[...],
                  preferred_element_type=jnp.float32)                      # (Tm, OW)
    o_ref[0] = out.astype(o_ref.dtype)


# ---------------------------------------------------------------------------
# Wrappers (two paths: VMEM-resident channel vs. banded HBM input)
# ---------------------------------------------------------------------------

def _resident_resize(image, size, out_dtype, row_tile, single_buffer_consts):
    c, h, w = image.shape
    oh = ow = size
    obytes = np.dtype(out_dtype).itemsize
    budget = int(_vmem_capacity_bytes() * 0.85)

    # Per-step VMEM footprint model (bytes).
    fixed = 2 * h * w * 4 + h * w * 2 + w * ow * 2          # x (f32, dbl) + bf16 temp + Ww^T
    per_row = 2 * h * 2 + 2 * ow * obytes + w * (4 + 2) + ow * 4
    avail = budget - fixed
    cap = max(8, min(256, avail // max(per_row, 1)))
    if row_tile is not None and oh % row_tile == 0:
        tm = int(row_tile)
    else:
        tm = _tile_candidates(oh, cap)[0]
    nt = oh // tm

    wh_bf = _row_weights_bf16(h, oh)       # (OH, H)
    wwt_bf = _col_weights_t_bf16(w, ow)    # (W, OW)

    # Megacore balance (v7x): for small channels put the (large) row-tile axis
    # first so the split axis has many iterations; re-DMAing the small x block
    # per tile is cheap.  For larger resident channels keep (C, nt) so the x
    # block index is constant over the inner axis (one DMA per channel).
    tiles_leading = (h * w * 4) <= (2 << 20)
    if tiles_leading:
        grid = (nt, c)
        x_map = lambda j, i: (i, 0, 0)
        wh_map = lambda j, i: (j, 0)
        wwt_map = lambda j, i: (0, 0)
        out_map = lambda j, i: (i, j, 0)
    else:
        grid = (c, nt)
        x_map = lambda i, j: (i, 0, 0)
        wh_map = lambda i, j: (j, 0)
        wwt_map = lambda i, j: (0, 0)
        out_map = lambda i, j: (i, j, 0)

    est = fixed + tm * per_row + (2 << 20)
    vmem_limit = int(min(max(est, 16 << 20), max(budget, 16 << 20)))

    flops = int(2 * c * oh * w * (h + ow))
    bytes_accessed = int((c * nt if tiles_leading else c) * h * w * 4
                         + (nt if tiles_leading else c * nt) * tm * h * 2
                         + w * ow * 2
                         + c * oh * ow * obytes)

    return pl.pallas_call(
        _resize_resident_kernel,
        out_shape=jax.ShapeDtypeStruct((c, oh, ow), out_dtype),
        grid=grid,
        in_specs=[
            pl.BlockSpec((1, h, w), x_map),
            pl.BlockSpec((tm, h), wh_map),
            _const_block_spec((w, ow), wwt_map, single_buffer_consts),
        ],
        out_specs=pl.BlockSpec((1, tm, ow), out_map),
        compiler_params=pltpu.CompilerParams(
            dimension_semantics=("parallel", "parallel"),
            vmem_limit_bytes=vmem_limit),
        cost_estimate=pl.CostEstimate(
            flops=flops, transcendentals=0, bytes_accessed=bytes_accessed),
    )(image, wh_bf, wwt_bf)


def _banded_resize(image, size, out_dtype, row_tile, single_buffer_consts):
    c, h, w = image.shape
    oh = ow = size
    obytes = np.dtype(out_dtype).itemsize
    budget = int(_vmem_capacity_bytes() * 0.85)

    def footprint(tm, bh):
        return (bh * w * (4 + 2)            # band buffer f32 + in-kernel bf16 copy
                + w * ow * 2                # Ww^T (single-buffered)
                + 2 * tm * bh * 2           # Wh band tile (dbl-buffered)
                + 2 * tm * ow * obytes      # output tile (dbl-buffered)
                + tm * w * (4 + 2)          # rows intermediate f32 + bf16
                + tm * ow * 4)              # f32 result before output cast

    def est_bh(tm):
        return min(h, _roundup(int(np.ceil(tm * h / oh)) + 10, 8))

    if row_tile is not None and oh % row_tile == 0:
        tm = int(row_tile)
    else:
        cands = _tile_candidates(oh, 256)
        tm = cands[-1]
        for t in cands:
            if footprint(t, est_bh(t)) + (2 << 20) <= budget:
                tm = t
                break
    nt = oh // tm

    starts, whb_bf, bh = _banded_row_weights(h, oh, tm)
    wwt_bf = _col_weights_t_bf16(w, ow)

    est = footprint(tm, bh) + (2 << 20)
    vmem_limit = int(min(max(est, 16 << 20), max(budget, 16 << 20)))

    flops = int(2 * c * oh * w * (bh + ow))
    bytes_accessed = int(c * nt * bh * w * 4      # band DMAs
                         + nt * tm * bh * 2       # banded Wh tiles
                         + w * ow * 2             # Ww^T
                         + c * oh * ow * obytes)  # output

    grid_spec = pltpu.PrefetchScalarGridSpec(
        num_scalar_prefetch=1,
        grid=(nt, c),
        in_specs=[
            pl.BlockSpec(memory_space=pl.ANY),                              # x stays in HBM
            pl.BlockSpec((1, tm, bh), lambda j, i, starts: (j, 0, 0)),
            _const_block_spec((w, ow), lambda j, i, starts: (0, 0),
                              single_buffer_consts),
        ],
        out_specs=pl.BlockSpec((1, tm, ow), lambda j, i, starts: (i, j, 0)),
        scratch_shapes=[pltpu.VMEM((bh, w), jnp.float32),
                        pltpu.SemaphoreType.DMA((1,))],
    )
    return pl.pallas_call(
        _resize_banded_kernel,
        out_shape=jax.ShapeDtypeStruct((c, oh, ow), out_dtype),
        grid_spec=grid_spec,
        compiler_params=pltpu.CompilerParams(
            dimension_semantics=("parallel", "parallel"),
            vmem_limit_bytes=vmem_limit),
        cost_estimate=pl.CostEstimate(
            flops=flops, transcendentals=0, bytes_accessed=bytes_accessed),
    )(starts, image, whb_bf, wwt_bf)


# ---------------------------------------------------------------------------
# Public module
# ---------------------------------------------------------------------------

class Resize:
    """JAX/Pallas equivalent of the PyTorch Resize module (bilinear,
    align_corners=False, antialias=False).  out_dtype=jnp.bfloat16 halves the
    HBM writeback for writeback-bound upscales."""

    def __init__(self, size: int = 1024, out_dtype=jnp.float32,
                 force_banded: bool = False, row_tile=None):
        self.size = int(size)
        self.out_dtype = out_dtype
        self._force_banded = force_banded
        self._row_tile = row_tile

    def __call__(self, image: jnp.ndarray) -> jnp.ndarray:
        if image.ndim not in (2, 3):
            raise ValueError("Image should be 2/3 dimensional")
        if image.ndim == 2:
            image = image[None, ...]  # unsqueeze(0): (H, W) -> (1, H, W)
        if image.dtype != jnp.float32:
            image = image.astype(jnp.float32)

        _, h, w = image.shape
        oh = ow = self.size
        obytes = np.dtype(self.out_dtype).itemsize
        budget = int(_vmem_capacity_bytes() * 0.85)

        # If the double-buffered full channel (+ constants + a minimal row
        # tile) cannot fit the VMEM budget, use the banded large-input path.
        fixed = 2 * h * w * 4 + h * w * 2 + w * ow * 2
        per_row = 2 * h * 2 + 2 * ow * obytes + w * (4 + 2) + ow * 4
        use_banded = self._force_banded or (fixed + 16 * per_row > budget)

        fn = _banded_resize if use_banded else _resident_resize
        try:
            return fn(image, self.size, self.out_dtype, self._row_tile, True)
        except Exception:
            # Retry with default (double-buffered) constant blocks in case this
            # jax build rejects pipeline_mode=pl.Buffered(1).
            return fn(image, self.size, self.out_dtype, self._row_tile, False)


def _reference_resize(image: jnp.ndarray, size: int) -> jnp.ndarray:
    """Pure-JAX f32 reference using the same separable weight matrices."""
    if image.ndim == 2:
        image = image[None, ...]
    _, h, w = image.shape
    wh = jnp.asarray(_bilinear_weight_matrix_np(h, size))
    ww = jnp.asarray(_bilinear_weight_matrix_np(w, size))
    return jnp.einsum("oh,chw,pw->cop", wh, image.astype(jnp.float32), ww)


if __name__ == "__main__":
    key = jax.random.PRNGKey(0)
    C, H, W = 4, 32, 32
    SIZE = 512  # small stand-in for the default 1024; exercises >1 row tile
    x = jax.random.normal(key, (C, H, W), dtype=jnp.float32)

    # 1) Resident path (small upscale), f32 output.
    resize = Resize(size=SIZE)
    y = jax.block_until_ready(resize(x))
    assert y.shape == (C, SIZE, SIZE), y.shape
    ref = _reference_resize(x, SIZE)
    err = float(jnp.max(jnp.abs(y - ref)))
    assert jnp.allclose(y, ref, atol=5e-2, rtol=5e-2), err

    # 2) 2-D (H, W) input path -> (1, SIZE, SIZE).
    x2d = jax.random.normal(jax.random.PRNGKey(1), (H, W), dtype=jnp.float32)
    y2d = jax.block_until_ready(resize(x2d))
    assert y2d.shape == (1, SIZE, SIZE), y2d.shape

    # 3) Banded (large-source) path, forced at a small shape: downscale
    #    (3, 160, 144) -> 64x64 with 16-row output tiles (4 band DMAs/channel).
    xb = jax.random.normal(jax.random.PRNGKey(2), (3, 160, 144), dtype=jnp.float32)
    yb = jax.block_until_ready(Resize(size=64, force_banded=True, row_tile=16)(xb))
    assert yb.shape == (3, 64, 64), yb.shape
    refb = _reference_resize(xb, 64)
    errb = float(jnp.max(jnp.abs(yb - refb)))
    assert jnp.allclose(yb, refb, atol=5e-2, rtol=5e-2), errb

    # 4) bf16 output option (halves HBM writeback).
    ybf = jax.block_until_ready(Resize(size=128, out_dtype=jnp.bfloat16)(x))
    assert ybf.shape == (C, 128, 128) and ybf.dtype == jnp.bfloat16

    print("KERNEL_OK")
</pallas_src>

<mosaic_0001>
module attributes {stable_mosaic.version = 11 : i64} {
  func.func @_resize_resident_kernel(%arg0: i32, %arg1: i32, %arg2: memref<1x32x32xf32, #tpu.memory_space<vmem>>, %arg3: memref<256x32xbf16, #tpu.memory_space<vmem>>, %arg4: memref<32x512xbf16, #tpu.memory_space<vmem>>, %arg5: memref<1x256x512xf32, #tpu.memory_space<vmem>>) attributes {dimension_semantics = [#tpu.dimension_semantics<parallel>, #tpu.dimension_semantics<parallel>], iteration_bounds = array<i64: 2, 4>, scalar_prefetch = 0 : i64, scratch_operands = 0 : i64, tpu.core_type = #tpu.core_type<tc>, window_params = [{transform_indices = @transform_0, window_bounds = array<i64: 1, 32, 32>}, {transform_indices = @transform_1, window_bounds = array<i64: 256, 32>}, {pipeline_mode = #tpu.pipeline_mode<synchronous>, transform_indices = @transform_2, window_bounds = array<i64: 32, 512>}, {transform_indices = @transform_3, window_bounds = array<i64: 1, 256, 512>}]} {
    %c0 = arith.constant 0 : index
    %c0_0 = arith.constant 0 : index
    %c0_1 = arith.constant 0 : index
    %0 = vector.load %arg2[%c0, %c0_0, %c0_1] : memref<1x32x32xf32, #tpu.memory_space<vmem>>, vector<1x32x32xf32>
    %1 = vector.shape_cast %0 : vector<1x32x32xf32> to vector<32x32xf32>
    %2 = arith.truncf %1 : vector<32x32xf32> to vector<32x32xbf16>
    %c0_2 = arith.constant 0 : index
    %c0_3 = arith.constant 0 : index
    %3 = vector.load %arg3[%c0_2, %c0_3] : memref<256x32xbf16, #tpu.memory_space<vmem>>, vector<256x32xbf16>
    %cst = arith.constant dense<0.000000e+00> : vector<256x32xf32>
    %4 = tpu.matmul %3, %2, %cst {dimension_numbers = #tpu.dot_dimension_numbers<[1], [0], [0], [1], [0, 0, 1, 1], [], []>} : vector<256x32xbf16>, vector<32x32xbf16>, vector<256x32xf32> -> vector<256x32xf32>
    %5 = arith.truncf %4 : vector<256x32xf32> to vector<256x32xbf16>
    %c0_4 = arith.constant 0 : index
    %c0_5 = arith.constant 0 : index
    %6 = vector.load %arg4[%c0_4, %c0_5] : memref<32x512xbf16, #tpu.memory_space<vmem>>, vector<32x512xbf16>
    %cst_6 = arith.constant dense<0.000000e+00> : vector<256x512xf32>
    %7 = tpu.matmul %5, %6, %cst_6 {dimension_numbers = #tpu.dot_dimension_numbers<[1], [0], [0], [1], [0, 0, 1, 1], [], []>} : vector<256x32xbf16>, vector<32x512xbf16>, vector<256x512xf32> -> vector<256x512xf32>
    %c0_7 = arith.constant 0 : index
    %c0_8 = arith.constant 0 : index
    %c0_9 = arith.constant 0 : index
    %8 = vector.load %arg5[%c0_7, %c0_8, %c0_9] : memref<1x256x512xf32, #tpu.memory_space<vmem>>, vector<1x256x512xf32>
    %9 = vector.shape_cast %8 : vector<1x256x512xf32> to vector<256x512xf32>
    %10 = vector.shape_cast %7 : vector<256x512xf32> to vector<1x256x512xf32>
    tpu.vector_store %arg5[%c0_7, %c0_8, %c0_9], %10 {strides = array<i32>} : memref<1x256x512xf32, #tpu.memory_space<vmem>>, vector<1x256x512xf32>,
    return
  }
  func.func @transform_0(%arg0: i32, %arg1: i32) -> (i32, i32, i32) {
    %c0_i32 = arith.constant 0 : i32
    %c0_i32_0 = arith.constant 0 : i32
    %c0_i32_1 = arith.constant 0 : i32
    return %arg1, %c0_i32, %c0_i32_0 : i32, i32, i32
  }
  func.func @transform_1(%arg0: i32, %arg1: i32) -> (i32, i32) {
    %c0_i32 = arith.constant 0 : i32
    %c0_i32_0 = arith.constant 0 : i32
    return %arg0, %c0_i32 : i32, i32
  }
  func.func @transform_2(%arg0: i32, %arg1: i32) -> (i32, i32) {
    %c0_i32 = arith.constant 0 : i32
    %c0_i32_0 = arith.constant 0 : i32
    %c0_i32_1 = arith.constant 0 : i32
    return %c0_i32, %c0_i32_0 : i32, i32
  }
  func.func @transform_3(%arg0: i32, %arg1: i32) -> (i32, i32, i32) {
    %c0_i32 = arith.constant 0 : i32
    %c0_i32_0 = arith.constant 0 : i32
    return %arg1, %arg0, %c0_i32 : i32, i32, i32
  }
}

module attributes {stable_mosaic.version = 11 : i64} {
  func.func @_resize_resident_kernel(%arg0: i32, %arg1: i32, %arg2: memref<1x32x32xf32, #tpu.memory_space<vmem>>, %arg3: memref<256x32xbf16, #tpu.memory_space<vmem>>, %arg4: memref<32x512xbf16, #tpu.memory_space<vmem>>, %arg5: memref<1x256x512xf32, #tpu.memory_space<vmem>>) attributes {dimension_semantics = [#tpu.dimension_semantics<parallel>, #tpu.dimension_semantics<parallel>], iteration_bounds = array<i64: 2, 4>, scalar_prefetch = 0 : i64, scratch_operands = 0 : i64, tpu.core_type = #tpu.core_type<tc>, window_params = [{transform_indices = @transform_0, window_bounds = array<i64: 1, 32, 32>}, {transform_indices = @transform_1, window_bounds = array<i64: 256, 32>}, {pipeline_mode = #tpu.pipeline_mode<synchronous>, transform_indices = @transform_2, window_bounds = array<i64: 32, 512>}, {transform_indices = @transform_3, window_bounds = array<i64: 1, 256, 512>}]} {
    %c0 = arith.constant 0 : index
    %c0_0 = arith.constant 0 : index
    %c0_1 = arith.constant 0 : index
    %0 = vector.load %arg2[%c0, %c0_0, %c0_1] : memref<1x32x32xf32, #tpu.memory_space<vmem>>, vector<1x32x32xf32>
    %1 = vector.shape_cast %0 : vector<1x32x32xf32> to vector<32x32xf32>
    %2 = arith.truncf %1 : vector<32x32xf32> to vector<32x32xbf16>
    %c0_2 = arith.constant 0 : index
    %c0_3 = arith.constant 0 : index
    %3 = vector.load %arg3[%c0_2, %c0_3] : memref<256x32xbf16, #tpu.memory_space<vmem>>, vector<256x32xbf16>
    %cst = arith.constant dense<0.000000e+00> : vector<256x32xf32>
    %4 = tpu.matmul %3, %2, %cst {dimension_numbers = #tpu.dot_dimension_numbers<[1], [0], [0], [1], [0, 0, 1, 1], [], []>} : vector<256x32xbf16>, vector<32x32xbf16>, vector<256x32xf32> -> vector<256x32xf32>
    %5 = arith.truncf %4 : vector<256x32xf32> to vector<256x32xbf16>
    %c0_4 = arith.constant 0 : index
    %c0_5 = arith.constant 0 : index
    %6 = vector.load %arg4[%c0_4, %c0_5] : memref<32x512xbf16, #tpu.memory_space<vmem>>, vector<32x512xbf16>
    %cst_6 = arith.constant dense<0.000000e+00> : vector<256x512xf32>
    %7 = tpu.matmul %5, %6, %cst_6 {dimension_numbers = #tpu.dot_dimension_numbers<[1], [0], [0], [1], [0, 0, 1, 1], [], []>} : vector<256x32xbf16>, vector<32x512xbf16>, vector<256x512xf32> -> vector<256x512xf32>
    %c0_7 = arith.constant 0 : index
    %c0_8 = arith.constant 0 : index
    %c0_9 = arith.constant 0 : index
    %8 = vector.load %arg5[%c0_7, %c0_8, %c0_9] : memref<1x256x512xf32, #tpu.memory_space<vmem>>, vector<1x256x512xf32>
    %9 = vector.shape_cast %8 : vector<1x256x512xf32> to vector<256x512xf32>
    %10 = vector.shape_cast %7 : vector<256x512xf32> to vector<1x256x512xf32>
    tpu.vector_store %arg5[%c0_7, %c0_8, %c0_9], %10 {strides = array<i32>} : memref<1x256x512xf32, #tpu.memory_space<vmem>>, vector<1x256x512xf32>,
    return
  }
  func.func @transform_0(%arg0: i32, %arg1: i32) -> (i32, i32, i32) {
    %c0_i32 = arith.constant 0 : i32
    %c0_i32_0 = arith.constant 0 : i32
    %c0_i32_1 = arith.constant 0 : i32
    return %arg1, %c0_i32, %c0_i32_0 : i32, i32, i32
  }
  func.func @transform_1(%arg0: i32, %arg1: i32) -> (i32, i32) {
    %c0_i32 = arith.constant 0 : i32
    %c0_i32_0 = arith.constant 0 : i32
    return %arg0, %c0_i32 : i32, i32
  }
  func.func @transform_2(%arg0: i32, %arg1: i32) -> (i32, i32) {
    %c0_i32 = arith.constant 0 : i32
    %c0_i32_0 = arith.constant 0 : i32
    %c0_i32_1 = arith.constant 0 : i32
    return %c0_i32, %c0_i32_0 : i32, i32
  }
  func.func @transform_3(%arg0: i32, %arg1: i32) -> (i32, i32, i32) {
    %c0_i32 = arith.constant 0 : i32
    %c0_i32_0 = arith.constant 0 : i32
    return %arg1, %arg0, %c0_i32 : i32, i32, i32
  }
}

</mosaic_0001>

<bundles_post_ra>
// kernel: tpu_custom_call.1
= control target key start
LH: loop header
LB: loop body
LE: loop exit
PB: predicated region body
PF: predicated region fallthrough
CT: control target
= control target key end

     0   :  { %s2286_s0 = inlined_call_operand.hbm [shape: f32[4,32,32], index: 0, kind: input, shape index: {}]   ;;  %s2287_s1 = inlined_call_operand.vmem [shape: bf16[512,32], index: 1, kind: input, shape index: {}]   ;;  %s2288_s2 = inlined_call_operand.hbm [shape: bf16[32,512], index: 2, kind: input, shape index: {}]   ;;  %s2289_s3 = inlined_call_operand.hbm [shape: f32[4,512,512], index: 3, kind: output, shape index: {}]  }
   0x1   :  { %2297 = sst [smem:[#allocation15_spill]] %s2288_s2 }
   0x2   :  { %2298 = sst [smem:[#allocation16_spill]] %s2289_s3 }
   0x3   :  { %8 = vsyncpa [#allocation3], 0 }
   0x4   :  { %10 = vsyncpa [#allocation3 + $0x1], 0 }
   0x5   :  { %11 = vsyncpa [#allocation6], 0 }
   0x6   :  { %12 = vsyncpa [#allocation4], 0 }
   0x7   :  { %14 = vsyncpa [#allocation4 + $0x1], 0  ;;  %s1833_s12 = smov 0   ;;  %s1835_s13 = smov 0  }
   0x8   :  { %s1837_s14 = smov 0   ;;  %s1839_s15 = smov 0  }
   0x9   :  { %s1841_s16 = smov 0   ;;  %s1843_s17 = smov 0  }
   0xa   :  { %s1845_s18 = smov 0   ;;  %s1847_s19 = smov 0  }
   0xb   :  { %s1849_s20 = smov 0   ;;  %s1851_s21 = smov 0  }
   0xc   :  { %s1853_s22 = smov 0  }
   0xd LB: > { %2299 = sst [smem:[#allocation11_spill]] %s1761_s12  ;;  %s1322_s23 = sadd.s32 4294967295, %s1801_s22   ;;  %s1801_s22 = sphi %s1853_s22, %s20_s22   ;;  %s1797_s21 = sphi %s1851_s21, %s2327_s21   ;;  %s1793_s20 = sphi %s1849_s20, %s2326_s20   ;;  %s1789_s19 = sphi %s1847_s19, %s2325_s19   ;;  %s1785_s18 = sphi %s1845_s18, %s2324_s18   ;;  %s1781_s17 = sphi %s1843_s17, %s2323_s17   ;;  %s1777_s16 = sphi %s1841_s16, %s2322_s16   ;;  %s1773_s15 = sphi %s1839_s15, %s2321_s15   ;;  %s1769_s14 = sphi %s1837_s14, %s2320_s14   ;;  %s1765_s13 = sphi %s1835_s13, %s2319_s13   ;;  %s1761_s12 = sphi %s1833_s12, %s2318_s12  }
   0xe   : > { %s1323_s24 = sadd.s32 4294967294, %s1801_s22   ;;  %p52_p0 = scmp.ne.s32.totalorder %s1777_s16, %s1773_s15 }
   0xf   : > { %p1889_p1 = scmp.eq.s32.totalorder %s1322_s23, 0  ;;  %p124_p2 = scmp.ne.s32.totalorder %s1769_s14, %s1765_s13 }
  0x10   : > { %p125_p3 = scmp.eq.s32.totalorder %s1322_s23, 7  ;;  %p130_p5 = scmp.ne.s32.totalorder %s1765_s13, %s1761_s12 }
  0x11   : > { %p1897_p4 = por %p1889_p1, %p52_p0  ;;  %p131_p7 = scmp.eq.s32.totalorder %s1323_s24, 7 }
  0x12   : > { %p1903_p6 = por %p125_p3, %p124_p2  ;;  %p1324_p8 = scmp.ge.s32.totalorder %s1801_s22, 1 }
  0x13   : > { %p138_p9 = scmp.lt.s32.totalorder %s1801_s22, 9  ;;  %p1909_p10 = por %p131_p7, %p130_p5 }
  0x14   : > { %s2302_s27 = scalar_select %p1903_p6, 1, 0 }
  0x15   : > { %s2304_s28 = scalar_select %p1909_p10, 1, 0 }
  0x16   : > { %2303 = sst [smem:[#allocation12_spill]] %s2302_s27  ;;  %p1913_p11 = pnand %p1324_p8, %p138_p9 }
  0x17   : > { %2305 = sst [smem:[#allocation13_spill]] %s2304_s28  ;;  %s1803_s30 = smov [#allocation5]  }
  0x18   : > { %s150_s4 = sshll.u32 %s1803_s30, 4  ;;  %p1483_p12 = pneg %p1913_p11  ;;  %s151_s4 = int_to_ptr.vmem [resolvable:$true] %s150_s4 }
  0x19   : > { %s1634_s5 = scalar_lea.vmem %s151_s4, 1024  ;;  %p1642_p7 = scmp.lt.s32.totalorder %s151_s4, %s151_s4 }
  0x1a   : > { %p1484_p13 = pnand %p1483_p12, %p1889_p1  ;;  %p1635_p2 = scmp.ne.s32.totalorder %s151_s4, %s1634_s5 }
  0x1b   : > { %p1643_p6 = scmp.lt.s32.totalorder %s1634_s5, %s1634_s5 }
  0x1c   : > { %p1625_p0 = pneg %p1484_p13 }
  0x1d   : > { %p1644_p10 = por %p1643_p6, %p1642_p7 }
  0x1e   : > { %p1637_p3 = pnand %p1635_p2, %p1625_p0 }
  0x20   : > { %p1638_p5 = pneg %p1637_p3 }
  0x22   : > { %p1645_p8 = pnand %p1644_p10, %p1638_p5 }
  0x24   : > { %1648 = shalt.err (!%p1645_p8)
}
  0x25   : > { %s1804_s6 = smov 256   ;;  %s1805_s7 = smov 16  }
  0x26   : > { %s2307_s2 = sld [smem:[#allocation15_spill]]  ;;  %s29_s10 = sadd.s32 1, %s1793_s20 }
  0x27   : > { %s32_s11 = sadd.s32 1, %s1797_s21  ;;  %p30_p6 = scmp.ge.s32.totalorder %s29_s10, 4 }
  0x28   : > { %s39_s15 = sadd.s32 1, %s1781_s17  ;;  %p46_p9 = scmp.ne.s32.totalorder %s1781_s17, %s1777_s16 }
  0x29   : > { %p47_p10 = scmp.eq.s32.totalorder %s1801_s22, 0  ;;  %s2329_s10 = smov (%p30_p6, %s29_s10), 0 }
  0x2a   : > { %2308 = sst [smem:[#allocation14_spill]] %s2329_s10  ;;  %s2331_s11 = smov (!%p30_p6, %s32_s11), %s1797_s21 }
  0x2b   : > { %s36_s23 = ssub.s32 %s1793_s20, %s2329_s10  ;;  %p1935_p12 = por %p47_p10, %p46_p9 }
  0x2c   : > { %1486 = dma.hbm_to_vmem [thread:$0]  (!%p1484_p13), %s2307_s2, 1024, %s151_s4, [#allocation6], %s1804_s6, %s1804_s6, %s1805_s7  }
  0x2d   : > { %p34_p13 = scmp.ge.s32.totalorder %s2331_s11, 2  ;;  %p37_p0 = scmp.eq.s32.totalorder %s36_s23, 0 }
  0x2e   : > { %s114_s30 = sadd.s32 1, %s1769_s14  ;;  %p1496_p2 = scmp.lt.s32.totalorder %s1801_s22, 8 }
  0x2f   : > { %s2333_s11 = smov (%p34_p13, %s2331_s11), 0  ;;  %s164_s6 = sand.u32 1, %s1781_s17  }
  0x30   : > { %s1944_s4 = scalar_select %p37_p0, %s1781_s17, %s39_s15  }
  0x31   : > { %s110_s5 = ssub.s32 %s1797_s21, %s2333_s11  ;;  %s1327_s8 = sshll.u32 %s164_s6, 5 }
  0x32   : > { %s111_s7 = sor.u32 %s110_s5, %s36_s23  ;;  %s1415_s9 = sshll.u32 %s1793_s20, 9 }
  0x33   : > { %p112_p3 = scmp.eq.s32.totalorder %s111_s7, 0  ;;  %s174_s12 = scalar_lea.hbm %s2286_s0, %s1415_s9 }
  0x34   : > { %s168_s3 = scalar_lea.vmem [#allocation2], %s1327_s8  ;;  %p1960_p5 = pnand %p1496_p2, %p1935_p12 }
  0x35   : > { %s1951_s2 = scalar_select %p112_p3, %s1769_s14, %s114_s30  }
  0x36   : > { %s175_s27 = sshll.u32 %s168_s3, 4  ;;  %s165_s23 = scalar_lea.sflag [#allocation3], %s164_s6  ;;  %s176_s27 = int_to_ptr.vmem [resolvable:$true] %s175_s27 }
  0x37   : > { %p1651_p7 = pneg %p1960_p5  ;;  %s1662_s5 = scalar_lea.vmem %s176_s27, 512 }
  0x38   : > { %p1663_p8 = scmp.ne.s32.totalorder %s176_s27, %s1662_s5  ;;  %s1806_s30 = smov [#allocation2]  }
  0x39   : > { %s1667_s28 = sshll.u32 %s1806_s30, 4  ;;  %s1668_s28 = int_to_ptr.vmem [resolvable:$false] %s1667_s28 }
  0x3a   : > { %p1665_p6 = pnand %p1663_p8, %p1651_p7  ;;  %s1669_s10 = scalar_lea.vmem %s1668_s28, 1024 }
  0x3b   : > { %p1670_p10 = scmp.lt.s32.totalorder %s176_s27, %s1668_s28  ;;  %p1671_p13 = scmp.lt.s32.totalorder %s1669_s10, %s1662_s5 }
  0x3c   : > { %p1666_p9 = pneg %p1665_p6 }
  0x3d   : > { %p1672_p0 = por %p1671_p13, %p1670_p10 }
  0x3f   : > { %p1673_p3 = pnand %p1672_p0, %p1666_p9 }
  0x41   : > { %1676 = shalt.err (!%p1673_p3)
}
  0x42   : > { %s1807_s3 = smov 128   ;;  %s1808_s24 = smov 8  }
  0x43   : > { %1490 = dma.hbm_to_vmem [thread:$0]  (!%p1960_p5), %s174_s12, 512, %s176_s27, %s165_s23, %s1807_s3, %s1807_s3, %s1808_s24  }
  0x44   : > { %196 = sbr.rel (%p1913_p11) target bundleno = 621 (0x26d), region = 32  ;;  %s198_s6 = sand.u32 (!%p1913_p11), 1, %s1777_s16  }
  0x45   : > { %s1331_s7 = sshll.u32 (!%p1913_p11), %s198_s6, 5  ;;  %s199_s8 = scalar_lea.sflag (!%p1913_p11), [#allocation3], %s198_s6 }
  0x46   : > { %s202_s9 = scalar_lea.vmem (!%p1913_p11), [#allocation2], %s1331_s7 }
  0x49   : > { %1748 = dma.done.wait (%p1897_p4), %s199_s8, 512  }
  0x4a   : > { %1750 = vsyncadd (%p1897_p4), %s199_s8, 4294966784 }
  0x4b   : > { %1752 = dma.done.wait (%p1889_p1), [#allocation6], 1024  }
  0x4c   : > { %1754 = vsyncadd (%p1889_p1), [#allocation6], 4294966272  ;;  %s1334_s12 = sshll.u32 %s1789_s19, 5  ;;  %v244_v0 = vld [vmem:[%s202_s9 + $0x10] sm:$0xff]  ;;  %v245_v1 = vld [vmem:[%s202_s9 + $0x18] sm:$0xff]  ;;  %vm360_vm0 = vcmask 261120  }
  0x4d   : > { %p235_p11 = scmp.lt.s32.totalorder %s1334_s12, 63  ;;  %v242_v2 = vld [vmem:[%s202_s9] sm:$0xff]  ;;  %v247_v3 = vpack.c.bf16 %v245_v1, %v244_v0  ;;  %v243_v4 = vld [vmem:[%s202_s9 + $0x8] sm:$0xff]  ;;  %v1809_v30 = vmov 0   ;;  %s231_s25 = sand.u32 1, %s1765_s13  }
  0x4e   : > { %v246_v5 = vpack.c.bf16 %v243_v4, %v242_v2  ;;  %v1611_v16 = vld [vmem:[#allocation5 + $0x20] ss:$16 sps:$4 sm:$0xff]   ;;  %v1613_v17 = vld [vmem:[#allocation5 + $0x24] ss:$16 sps:$4 sm:$0xff]   ;;  %v1614_v18 = vld [vmem:[#allocation5 + $0x28] ss:$16 sps:$4 sm:$0xff]  }
  0x4f   : > { %s2335_s12 = smov (!%p235_p11, %s1334_s12), 63  ;;  %1435 = vmatprep.subr.bf16.mxu0 %v247_v3  ;;  %1471 = vmatprep.subr.bf16.mxu1 %v247_v3  ;;  %v1616_v19 = vld [vmem:[#allocation5 + $0x2c] ss:$16 sps:$4 sm:$0xff]   ;;  %v1619_v20 = vld [vmem:[#allocation5 + $0x4] ss:$16 sps:$4 sm:$0xff]   ;;  %s1333_s26 = sshll.u32 %s231_s25, 10 }
  0x50   : > { %s1335_s27 = sshll.u32 %s2335_s12, 2  ;;  %1436 = vmatpush3.bf16.msra.mxu0 %v247_v3  ;;  %1473 = vmatpush3.bf16.msra.mxu1 %v247_v3  ;;  %v1617_v21 = vld [vmem:[#allocation5] ss:$16 sps:$4 sm:$0xff]   ;;  %v1622_v22 = vld [vmem:[#allocation5 + $0xc] ss:$16 sps:$4 sm:$0xff]   ;;  %s2084_s5 = scalar_lea.vmem [#allocation7], %s1333_s26 }
  0x51   : > { %s1983_s23 = scalar_lea.vmem %s2287_s1, %s1335_s27  ;;  %1437 = vmatprep.subr.bf16.mxu0 %v246_v5  ;;  %1472 = vmatprep.subr.bf16.mxu1 %v246_v5  ;;  %v1620_v25 = vld [vmem:[#allocation5 + $0x8] ss:$16 sps:$4 sm:$0xff]   ;;  %s1416_s30 = sshll.u32 %s1789_s19, 7 }
  0x52   : > { %v1595_v6 = vld [vmem:[%s1983_s23] sm:$0xff]   ;;  %v1596_v7 = vld [vmem:[%s1983_s23 + $0x8] sm:$0xff]   ;;  %v1597_v8 = vld [vmem:[%s1983_s23 + $0x10] sm:$0xff]   ;;  %s1411_s28 = sshll.u32 %s1785_s18, 8  ;;  %s1213_s19 = sshll.u32 %s2084_s5, 4  ;;  %s2218_s19 = int_to_ptr.vmem [resolvable:$true] %s1213_s19 }
  0x53   : > { %1439 = vmatprep.mubr.msk.bf16.mxu0 %vm360_vm0, %v1595_v6  ;;  %v1603_v9 = vld [vmem:[%s1983_s23 + $0x40] sm:$0xff]   ;;  %v1604_v10 = vld [vmem:[%s1983_s23 + $0x48] sm:$0xff]   ;;  %v1605_v11 = vld [vmem:[%s1983_s23 + $0x50] sm:$0xff]   ;;  %s1210_s10 = sadd.s32 %s1416_s30, %s1411_s28  ;;  %s2311_s3 = sld [smem:[#allocation12_spill]] }
  0x54   : > { %1438 = vmatpush3.bf16.msra.mxu0 %v246_v5  ;;  %1474 = vmatpush3.bf16.msra.mxu1 %v246_v5  ;;  %v1598_v12 = vld [vmem:[%s1983_s23 + $0x18] sm:$0xff]   ;;  %v1599_v13 = vld [vmem:[%s1983_s23 + $0x20] sm:$0xff]   ;;  %v1600_v23 = vld [vmem:[%s1983_s23 + $0x28] sm:$0xff]   ;;  %s1412_s18 = sshll.u32 %s1210_s10, 7  ;;  %s2312_s7 = sld [smem:[#allocation16_spill]] }
  0x55   : > { %1455 = vmatprep.mubr.msk.bf16.mxu1 %vm360_vm0, %v1603_v9  ;;  %v1606_v14 = vld [vmem:[%s1983_s23 + $0x58] sm:$0xff]   ;;  %v1607_v15 = vld [vmem:[%s1983_s23 + $0x60] sm:$0xff]   ;;  %694 = vmatprep.subr.bf16.mxu1 %v1613_v17  ;;  %v1601_v24 = vld [vmem:[%s1983_s23 + $0x30] sm:$0xff]   ;;  %s2226_s9 = scalar_lea.sflag [#allocation4], %s231_s25  ;;  %s1677_s12 = scalar_lea.vmem %s2218_s19, 16384 }
  0x56   : > { %887 = vmatprep.subr.bf16.mxu0 %v1616_v19  ;;  %v1608_v26 = vld [vmem:[%s1983_s23 + $0x68] sm:$0xff]   ;;  %v1609_v27 = vld [vmem:[%s1983_s23 + $0x70] sm:$0xff]   ;;  %v1602_v28 = vld [vmem:[%s1983_s23 + $0x38] sm:$0xff]   ;;  %p1678_p1 = scmp.ne.s32.totalorder %s2218_s19, %s1677_s12  ;;  %s1810_s27 = smov [#allocation7]  }
  0x57   : > { %1440 = vmatmul.mubr.msk.bf16.vlgmr.msra.gmra.mxu0 %vm360_vm0, %v1596_v7  ;;  %1456 = vmatmul.mubr.msk.bf16.vlgmr.msra.gmra.mxu1 %vm360_vm0, %v1604_v10  ;;  %v1610_v29 = vld [vmem:[%s1983_s23 + $0x78] sm:$0xff]   ;;  %s1681_s29 = sshll.u32 %s1810_s27, 4  ;;  %s1682_s29 = int_to_ptr.vmem [resolvable:$false] %s1681_s29 }
  0x58   : > { %1443 = vmatprep.mubr.msk.bf16.mxu0 %vm360_vm0, %v1597_v8  ;;  %1459 = vmatprep.mubr.msk.bf16.mxu1 %vm360_vm0, %v1605_v11  ;;  %s1683_s15 = scalar_lea.vmem %s1682_s29, 32768  ;;  %p1684_p5 = scmp.lt.s32.totalorder %s2218_s19, %s1682_s29 }
  0x59   : > { %695 = vmatpush1.bf16.msra.mxu1 %v1611_v16  ;;  %888 = vmatpush1.bf16.msra.mxu0 %v1614_v18  ;;  %p2313_p4 = scmp.ne.s32.totalorder %s2311_s3, 0  ;;  %p1685_p7 = scmp.lt.s32.totalorder %s1683_s15, %s1677_s12 }
  0x5a   : > { %696 = vmatprep.subr.bf16.mxu1 %v1619_v20  ;;  %889 = vmatprep.subr.bf16.mxu0 %v1622_v22  ;;  %s2216_s8 = scalar_lea.hbm %s2312_s7, %s1412_s18 }
  0x5b   : > { %p1679_p12 = pnand %p1678_p1, %p2313_p4  ;;  %p1686_p8 = por %p1685_p7, %p1684_p5 }
  0x5d   : > { %697 = vmatpush1.bf16.msra.mxu1 %v1617_v21  ;;  %890 = vmatpush1.bf16.msra.mxu0 %v1620_v25  ;;  %p1680_p2 = pneg %p1679_p12 }
  0x5f   : > { %1444 = vmatmul.mubr.msk.bf16.gmra.mxu0 %vm360_vm0, %v1598_v12  ;;  %1460 = vmatmul.mubr.msk.bf16.gmra.mxu1 %vm360_vm0, %v1606_v14  ;;  %p1687_p6 = pnand %p1686_p8, %p1680_p2 }
  0x60   : > { %1447 = vmatprep.mubr.msk.bf16.mxu0 %vm360_vm0, %v1599_v13  ;;  %1463 = vmatprep.mubr.msk.bf16.mxu1 %vm360_vm0, %v1607_v15 }
  0x67   : > { %1448 = vmatmul.mubr.msk.bf16.gmra.mxu0 %vm360_vm0, %v1600_v23  ;;  %1464 = vmatmul.mubr.msk.bf16.gmra.mxu1 %vm360_vm0, %v1608_v26 }
  0x68   : > { %1451 = vmatprep.mubr.msk.bf16.mxu0 %vm360_vm0, %v1601_v24  ;;  %1467 = vmatprep.mubr.msk.bf16.mxu1 %vm360_vm0, %v1609_v27 }
  0x6f   : > { %1452 = vmatmul.mubr.msk.bf16.gmra.mxu0 %vm360_vm0, %v1602_v28  ;;  %1468 = vmatmul.mubr.msk.bf16.gmra.mxu1 %vm360_vm0, %v1610_v29 }
  0x70   : > { %714 = vmatprep.mubr.bf16.mxu1 %v1809_v30  ;;  %907 = vmatprep.mubr.bf16.mxu0 %v1809_v30 }
 0x117   : > { %v1441_v31 = vpop.f32.mrf.mxu0  ;;  %v1457_v54 = vpop.f32.mrf.mxu1 }
 0x119   : > { %v443_v32 = vpop.f32.mrf.mxu0  ;;  %v507_v55 = vpop.f32.mrf.mxu1 }
 0x11b   : > { %v1442_v33 = vpop.f32.mrf.mxu0  ;;  %v1458_v57 = vpop.f32.mrf.mxu1 }
 0x11c   : > { %v571_v38 = vpack.c.bf16 %v1442_v33, %v1441_v31  ;;  %v579_v62 = vpack.c.bf16 %v1458_v57, %v1457_v54 }
 0x11d   : > { %v446_v34 = vpop.f32.mrf.mxu0  ;;  %v510_v58 = vpop.f32.mrf.mxu1 }
 0x11e   : > { %v570_v35 = vpack.c.bf16 %v446_v34, %v443_v32  ;;  %v578_v59 = vpack.c.bf16 %v510_v58, %v507_v55 }
 0x11f   : > { %v1445_v36 = vpop.f32.mrf.mxu0  ;;  %v1461_v60 = vpop.f32.mrf.mxu1 }
 0x120   : > { %1376 = vmatmul.mubr.msk.bf16.vlgmr.msra.gmra.mxu1 %vm360_vm0, %v570_v35  ;;  %1392 = vmatmul.mubr.msk.bf16.vlgmr.msra.gmra.mxu0 %vm360_vm0, %v570_v35 }
 0x121   : > { %724 = vmatprep.mubr.bf16.mxu1 %v1809_v30  ;;  %917 = vmatprep.mubr.bf16.mxu0 %v1809_v30  ;;  %v459_v37 = vpop.f32.mrf.mxu0  ;;  %v523_v61 = vpop.f32.mrf.mxu1 }
 0x123   : > { %v1446_v39 = vpop.f32.mrf.mxu0  ;;  %v1462_v63 = vpop.f32.mrf.mxu1 }
 0x124   : > { %v573_v44 = vpack.c.bf16 %v1446_v39, %v1445_v36  ;;  %v581_v4 = vpack.c.bf16 %v1462_v63, %v1461_v60 }
 0x125   : > { %v462_v40 = vpop.f32.mrf.mxu0  ;;  %v526_v0 = vpop.f32.mrf.mxu1 }
 0x126   : > { %v572_v41 = vpack.c.bf16 %v462_v40, %v459_v37  ;;  %v580_v1 = vpack.c.bf16 %v526_v0, %v523_v61 }
 0x127   : > { %v1449_v42 = vpop.f32.mrf.mxu0  ;;  %v1465_v2 = vpop.f32.mrf.mxu1 }
 0x128   : > { %1377 = vmatmul.mubr.msk.bf16.gmra.mxu1 %vm360_vm0, %v571_v38  ;;  %1393 = vmatmul.mubr.msk.bf16.gmra.mxu0 %vm360_vm0, %v571_v38 }
 0x129   : > { %734 = vmatprep.mubr.bf16.mxu1 %v1809_v30  ;;  %927 = vmatprep.mubr.bf16.mxu0 %v1809_v30  ;;  %v475_v43 = vpop.f32.mrf.mxu0  ;;  %v539_v3 = vpop.f32.mrf.mxu1 }
 0x12b   : > { %v1450_v45 = vpop.f32.mrf.mxu0  ;;  %v1466_v5 = vpop.f32.mrf.mxu1 }
 0x12c   : > { %v575_v50 = vpack.c.bf16 %v1450_v45, %v1449_v42  ;;  %v583_v10 = vpack.c.bf16 %v1466_v5, %v1465_v2 }
 0x12d   : > { %v478_v46 = vpop.f32.mrf.mxu0  ;;  %v542_v6 = vpop.f32.mrf.mxu1 }
 0x12e   : > { %v574_v47 = vpack.c.bf16 %v478_v46, %v475_v43  ;;  %v582_v7 = vpack.c.bf16 %v542_v6, %v539_v3 }
 0x12f   : > { %v1453_v48 = vpop.f32.mrf.mxu0  ;;  %v1469_v8 = vpop.f32.mrf.mxu1 }
 0x130   : > { %1378 = vmatmul.mubr.msk.bf16.gmra.mxu1 %vm360_vm0, %v572_v41  ;;  %1394 = vmatmul.mubr.msk.bf16.gmra.mxu0 %vm360_vm0, %v572_v41 }
 0x131   : > { %744 = vmatprep.mubr.bf16.mxu1 %v1809_v30  ;;  %937 = vmatprep.mubr.bf16.mxu0 %v1809_v30  ;;  %v491_v49 = vpop.f32.mrf.mxu0  ;;  %v555_v9 = vpop.f32.mrf.mxu1 }
 0x133   : > { %v1454_v51 = vpop.f32.mrf.mxu0  ;;  %v1470_v11 = vpop.f32.mrf.mxu1 }
 0x134   : > { %v577_v56 = vpack.c.bf16 %v1454_v51, %v1453_v48  ;;  %v585_v14 = vpack.c.bf16 %v1470_v11, %v1469_v8 }
 0x135   : > { %v494_v52 = vpop.f32.mrf.mxu0  ;;  %v558_v12 = vpop.f32.mrf.mxu1 }
 0x136   : > { %v576_v53 = vpack.c.bf16 %v494_v52, %v491_v49  ;;  %v584_v13 = vpack.c.bf16 %v558_v12, %v555_v9 }
 0x138   : > { %1379 = vmatmul.mubr.msk.bf16.gmra.mxu1 %vm360_vm0, %v573_v44  ;;  %1395 = vmatmul.mubr.msk.bf16.gmra.mxu0 %vm360_vm0, %v573_v44 }
 0x139   : > { %754 = vmatprep.mubr.bf16.mxu1 %v1809_v30  ;;  %947 = vmatprep.mubr.bf16.mxu0 %v1809_v30 }
 0x140   : > { %1380 = vmatmul.mubr.msk.bf16.gmra.mxu1 %vm360_vm0, %v574_v47  ;;  %1396 = vmatmul.mubr.msk.bf16.gmra.mxu0 %vm360_vm0, %v574_v47 }
 0x141   : > { %764 = vmatprep.mubr.bf16.mxu1 %v1809_v30  ;;  %957 = vmatprep.mubr.bf16.mxu0 %v1809_v30 }
 0x148   : > { %1381 = vmatmul.mubr.msk.bf16.gmra.mxu1 %vm360_vm0, %v575_v50  ;;  %1397 = vmatmul.mubr.msk.bf16.gmra.mxu0 %vm360_vm0, %v575_v50 }
 0x149   : > { %774 = vmatprep.mubr.bf16.mxu1 %v1809_v30  ;;  %967 = vmatprep.mubr.bf16.mxu0 %v1809_v30 }
 0x150   : > { %1382 = vmatmul.mubr.msk.bf16.gmra.mxu1 %vm360_vm0, %v576_v53  ;;  %1398 = vmatmul.mubr.msk.bf16.gmra.mxu0 %vm360_vm0, %v576_v53 }
 0x151   : > { %784 = vmatprep.mubr.bf16.mxu1 %v1809_v30  ;;  %977 = vmatprep.mubr.bf16.mxu0 %v1809_v30 }
 0x158   : > { %1383 = vmatmul.mubr.msk.bf16.gmra.mxu1 %vm360_vm0, %v577_v56  ;;  %1399 = vmatmul.mubr.msk.bf16.gmra.mxu0 %vm360_vm0, %v577_v56 }
 0x159   : > { %794 = vmatprep.mubr.bf16.mxu1 %v1809_v30  ;;  %987 = vmatprep.mubr.bf16.mxu0 %v1809_v30 }
 0x160   : > { %1384 = vmatmul.mubr.msk.bf16.gmra.mxu1 %vm360_vm0, %v578_v59  ;;  %1400 = vmatmul.mubr.msk.bf16.gmra.mxu0 %vm360_vm0, %v578_v59 }
 0x161   : > { %804 = vmatprep.mubr.bf16.mxu1 %v1809_v30  ;;  %997 = vmatprep.mubr.bf16.mxu0 %v1809_v30 }
 0x168   : > { %1385 = vmatmul.mubr.msk.bf16.gmra.mxu1 %vm360_vm0, %v579_v62  ;;  %1401 = vmatmul.mubr.msk.bf16.gmra.mxu0 %vm360_vm0, %v579_v62 }
 0x169   : > { %814 = vmatprep.mubr.bf16.mxu1 %v1809_v30  ;;  %1007 = vmatprep.mubr.bf16.mxu0 %v1809_v30 }
 0x170   : > { %1386 = vmatmul.mubr.msk.bf16.gmra.mxu1 %vm360_vm0, %v580_v1  ;;  %1402 = vmatmul.mubr.msk.bf16.gmra.mxu0 %vm360_vm0, %v580_v1 }
 0x171   : > { %824 = vmatprep.mubr.bf16.mxu1 %v1809_v30  ;;  %1017 = vmatprep.mubr.bf16.mxu0 %v1809_v30 }
 0x178   : > { %1387 = vmatmul.mubr.msk.bf16.gmra.mxu1 %vm360_vm0, %v581_v4  ;;  %1403 = vmatmul.mubr.msk.bf16.gmra.mxu0 %vm360_vm0, %v581_v4 }
 0x179   : > { %834 = vmatprep.mubr.bf16.mxu1 %v1809_v30  ;;  %1027 = vmatprep.mubr.bf16.mxu0 %v1809_v30 }
 0x180   : > { %1388 = vmatmul.mubr.msk.bf16.gmra.mxu1 %vm360_vm0, %v582_v7  ;;  %1404 = vmatmul.mubr.msk.bf16.gmra.mxu0 %vm360_vm0, %v582_v7 }
 0x181   : > { %844 = vmatprep.mubr.bf16.mxu1 %v1809_v30  ;;  %1037 = vmatprep.mubr.bf16.mxu0 %v1809_v30 }
 0x188   : > { %1389 = vmatmul.mubr.msk.bf16.gmra.mxu1 %vm360_vm0, %v583_v10  ;;  %1405 = vmatmul.mubr.msk.bf16.gmra.mxu0 %vm360_vm0, %v583_v10 }
 0x189   : > { %854 = vmatprep.mubr.bf16.mxu1 %v1809_v30  ;;  %1047 = vmatprep.mubr.bf16.mxu0 %v1809_v30 }
 0x190   : > { %1390 = vmatmul.mubr.msk.bf16.gmra.mxu1 %vm360_vm0, %v584_v13  ;;  %1406 = vmatmul.mubr.msk.bf16.gmra.mxu0 %vm360_vm0, %v584_v13 }
 0x191   : > { %864 = vmatprep.mubr.bf16.mxu1 %v1809_v30  ;;  %1057 = vmatprep.mubr.bf16.mxu0 %v1809_v30 }
 0x198   : > { %1391 = vmatmul.mubr.msk.bf16.gmra.mxu1 %vm360_vm0, %v585_v14  ;;  %1407 = vmatmul.mubr.msk.bf16.gmra.mxu0 %vm360_vm0, %v585_v14 }
 0x1e0   : > { %v716_v15 = vpop.f32.mrf.mxu1  ;;  %v909_v16 = vpop.f32.mrf.mxu0 }
 0x1e1   : > { %1068 = vst [vmem:[%s2084_s5] sm:$0xff] %v716_v15  ;;  %1070 = vst [vmem:[%s2084_s5 + $0x10] sm:$0xff] %v909_v16 }
 0x1e2   : > { %v718_v17 = vpop.f32.mrf.mxu1  ;;  %v911_v18 = vpop.f32.mrf.mxu0 }
 0x1e3   : > { %1069 = vst [vmem:[%s2084_s5 + $0x8] sm:$0xff] %v718_v17  ;;  %1071 = vst [vmem:[%s2084_s5 + $0x18] sm:$0xff] %v911_v18 }
 0x1e4   : > { %v720_v19 = vpop.f32.mrf.mxu1  ;;  %v913_v20 = vpop.f32.mrf.mxu0 }
 0x1e5   : > { %1072 = vst [vmem:[%s2084_s5 + $0x20] sm:$0xff] %v720_v19  ;;  %1074 = vst [vmem:[%s2084_s5 + $0x30] sm:$0xff] %v913_v20 }
 0x1e6   : > { %v722_v21 = vpop.f32.mrf.mxu1  ;;  %v915_v22 = vpop.f32.mrf.mxu0 }
 0x1e7   : > { %1073 = vst [vmem:[%s2084_s5 + $0x28] sm:$0xff] %v722_v21  ;;  %1075 = vst [vmem:[%s2084_s5 + $0x38] sm:$0xff] %v915_v22 }
 0x1e8   : > { %v726_v23 = vpop.f32.mrf.mxu1  ;;  %v919_v24 = vpop.f32.mrf.mxu0 }
 0x1e9   : > { %1076 = vst [vmem:[%s2084_s5 + $0x40] sm:$0xff] %v726_v23  ;;  %1078 = vst [vmem:[%s2084_s5 + $0x50] sm:$0xff] %v919_v24 }
 0x1ea   : > { %v728_v25 = vpop.f32.mrf.mxu1  ;;  %v921_v26 = vpop.f32.mrf.mxu0 }
 0x1eb   : > { %1077 = vst [vmem:[%s2084_s5 + $0x48] sm:$0xff] %v728_v25  ;;  %1079 = vst [vmem:[%s2084_s5 + $0x58] sm:$0xff] %v921_v26 }
 0x1ec   : > { %v730_v27 = vpop.f32.mrf.mxu1  ;;  %v923_v28 = vpop.f32.mrf.mxu0 }
 0x1ed   : > { %1080 = vst [vmem:[%s2084_s5 + $0x60] sm:$0xff] %v730_v27  ;;  %1082 = vst [vmem:[%s2084_s5 + $0x70] sm:$0xff] %v923_v28 }
 0x1ee   : > { %v732_v29 = vpop.f32.mrf.mxu1  ;;  %v925_v30 = vpop.f32.mrf.mxu0 }
 0x1ef   : > { %1081 = vst [vmem:[%s2084_s5 + $0x68] sm:$0xff] %v732_v29  ;;  %1083 = vst [vmem:[%s2084_s5 + $0x78] sm:$0xff] %v925_v30 }
 0x1f0   : > { %v736_v31 = vpop.f32.mrf.mxu1  ;;  %v929_v32 = vpop.f32.mrf.mxu0 }
 0x1f1   : > { %1084 = vst [vmem:[%s2084_s5 + $0x80] sm:$0xff] %v736_v31  ;;  %1086 = vst [vmem:[%s2084_s5 + $0x90] sm:$0xff] %v929_v32 }
 0x1f2   : > { %v738_v33 = vpop.f32.mrf.mxu1  ;;  %v931_v34 = vpop.f32.mrf.mxu0 }
 0x1f3   : > { %1085 = vst [vmem:[%s2084_s5 + $0x88] sm:$0xff] %v738_v33  ;;  %1087 = vst [vmem:[%s2084_s5 + $0x98] sm:$0xff] %v931_v34 }
 0x1f4   : > { %v740_v35 = vpop.f32.mrf.mxu1  ;;  %v933_v36 = vpop.f32.mrf.mxu0 }
 0x1f5   : > { %1088 = vst [vmem:[%s2084_s5 + $0xa0] sm:$0xff] %v740_v35  ;;  %1090 = vst [vmem:[%s2084_s5 + $0xb0] sm:$0xff] %v933_v36 }
 0x1f6   : > { %v742_v37 = vpop.f32.mrf.mxu1  ;;  %v935_v38 = vpop.f32.mrf.mxu0 }
 0x1f7   : > { %1089 = vst [vmem:[%s2084_s5 + $0xa8] sm:$0xff] %v742_v37  ;;  %1091 = vst [vmem:[%s2084_s5 + $0xb8] sm:$0xff] %v935_v38 }
 0x1f8   : > { %v746_v39 = vpop.f32.mrf.mxu1  ;;  %v939_v40 = vpop.f32.mrf.mxu0 }
 0x1f9   : > { %1092 = vst [vmem:[%s2084_s5 + $0xc0] sm:$0xff] %v746_v39  ;;  %1094 = vst [vmem:[%s2084_s5 + $0xd0] sm:$0xff] %v939_v40 }
 0x1fa   : > { %v748_v41 = vpop.f32.mrf.mxu1  ;;  %v941_v42 = vpop.f32.mrf.mxu0 }
 0x1fb   : > { %1093 = vst [vmem:[%s2084_s5 + $0xc8] sm:$0xff] %v748_v41  ;;  %1095 = vst [vmem:[%s2084_s5 + $0xd8] sm:$0xff] %v941_v42 }
 0x1fc   : > { %v750_v43 = vpop.f32.mrf.mxu1  ;;  %v943_v44 = vpop.f32.mrf.mxu0 }
 0x1fd   : > { %1096 = vst [vmem:[%s2084_s5 + $0xe0] sm:$0xff] %v750_v43  ;;  %1098 = vst [vmem:[%s2084_s5 + $0xf0] sm:$0xff] %v943_v44 }
 0x1fe   : > { %v752_v45 = vpop.f32.mrf.mxu1  ;;  %v945_v46 = vpop.f32.mrf.mxu0 }
 0x1ff   : > { %1097 = vst [vmem:[%s2084_s5 + $0xe8] sm:$0xff] %v752_v45  ;;  %1099 = vst [vmem:[%s2084_s5 + $0xf8] sm:$0xff] %v945_v46 }
 0x200   : > { %v756_v47 = vpop.f32.mrf.mxu1  ;;  %v949_v48 = vpop.f32.mrf.mxu0 }
 0x201   : > { %1100 = vst [vmem:[%s2084_s5 + $0x100] sm:$0xff] %v756_v47  ;;  %1102 = vst [vmem:[%s2084_s5 + $0x110] sm:$0xff] %v949_v48 }
 0x202   : > { %v758_v49 = vpop.f32.mrf.mxu1  ;;  %v951_v50 = vpop.f32.mrf.mxu0 }
 0x203   : > { %1101 = vst [vmem:[%s2084_s5 + $0x108] sm:$0xff] %v758_v49  ;;  %1103 = vst [vmem:[%s2084_s5 + $0x118] sm:$0xff] %v951_v50 }
 0x204   : > { %v760_v51 = vpop.f32.mrf.mxu1  ;;  %v953_v52 = vpop.f32.mrf.mxu0 }
 0x205   : > { %1104 = vst [vmem:[%s2084_s5 + $0x120] sm:$0xff] %v760_v51  ;;  %1106 = vst [vmem:[%s2084_s5 + $0x130] sm:$0xff] %v953_v52 }
 0x206   : > { %v762_v53 = vpop.f32.mrf.mxu1  ;;  %v955_v54 = vpop.f32.mrf.mxu0 }
 0x207   : > { %1105 = vst [vmem:[%s2084_s5 + $0x128] sm:$0xff] %v762_v53  ;;  %1107 = vst [vmem:[%s2084_s5 + $0x138] sm:$0xff] %v955_v54 }
 0x208   : > { %v766_v55 = vpop.f32.mrf.mxu1  ;;  %v959_v56 = vpop.f32.mrf.mxu0 }
 0x209   : > { %1108 = vst [vmem:[%s2084_s5 + $0x140] sm:$0xff] %v766_v55  ;;  %1110 = vst [vmem:[%s2084_s5 + $0x150] sm:$0xff] %v959_v56 }
 0x20a   : > { %v768_v57 = vpop.f32.mrf.mxu1  ;;  %v961_v58 = vpop.f32.mrf.mxu0 }
 0x20b   : > { %1109 = vst [vmem:[%s2084_s5 + $0x148] sm:$0xff] %v768_v57  ;;  %1111 = vst [vmem:[%s2084_s5 + $0x158] sm:$0xff] %v961_v58 }
 0x20c   : > { %v770_v59 = vpop.f32.mrf.mxu1  ;;  %v963_v60 = vpop.f32.mrf.mxu0 }
 0x20d   : > { %1112 = vst [vmem:[%s2084_s5 + $0x160] sm:$0xff] %v770_v59  ;;  %1114 = vst [vmem:[%s2084_s5 + $0x170] sm:$0xff] %v963_v60 }
 0x20e   : > { %v772_v61 = vpop.f32.mrf.mxu1  ;;  %v965_v62 = vpop.f32.mrf.mxu0 }
 0x20f   : > { %1113 = vst [vmem:[%s2084_s5 + $0x168] sm:$0xff] %v772_v61  ;;  %1115 = vst [vmem:[%s2084_s5 + $0x178] sm:$0xff] %v965_v62 }
 0x210   : > { %v776_v63 = vpop.f32.mrf.mxu1  ;;  %v969_v0 = vpop.f32.mrf.mxu0 }
 0x211   : > { %1116 = vst [vmem:[%s2084_s5 + $0x180] sm:$0xff] %v776_v63  ;;  %1118 = vst [vmem:[%s2084_s5 + $0x190] sm:$0xff] %v969_v0 }
 0x212   : > { %v778_v1 = vpop.f32.mrf.mxu1  ;;  %v971_v2 = vpop.f32.mrf.mxu0 }
 0x213   : > { %1117 = vst [vmem:[%s2084_s5 + $0x188] sm:$0xff] %v778_v1  ;;  %1119 = vst [vmem:[%s2084_s5 + $0x198] sm:$0xff] %v971_v2 }
 0x214   : > { %v780_v3 = vpop.f32.mrf.mxu1  ;;  %v973_v4 = vpop.f32.mrf.mxu0 }
 0x215   : > { %1120 = vst [vmem:[%s2084_s5 + $0x1a0] sm:$0xff] %v780_v3  ;;  %1122 = vst [vmem:[%s2084_s5 + $0x1b0] sm:$0xff] %v973_v4 }
 0x216   : > { %v782_v5 = vpop.f32.mrf.mxu1  ;;  %v975_v6 = vpop.f32.mrf.mxu0 }
 0x217   : > { %1121 = vst [vmem:[%s2084_s5 + $0x1a8] sm:$0xff] %v782_v5  ;;  %1123 = vst [vmem:[%s2084_s5 + $0x1b8] sm:$0xff] %v975_v6 }
 0x218   : > { %v786_v7 = vpop.f32.mrf.mxu1  ;;  %v979_v8 = vpop.f32.mrf.mxu0 }
 0x219   : > { %1124 = vst [vmem:[%s2084_s5 + $0x1c0] sm:$0xff] %v786_v7  ;;  %1126 = vst [vmem:[%s2084_s5 + $0x1d0] sm:$0xff] %v979_v8 }
 0x21a   : > { %v788_v9 = vpop.f32.mrf.mxu1  ;;  %v981_v10 = vpop.f32.mrf.mxu0 }
 0x21b   : > { %1125 = vst [vmem:[%s2084_s5 + $0x1c8] sm:$0xff] %v788_v9  ;;  %1127 = vst [vmem:[%s2084_s5 + $0x1d8] sm:$0xff] %v981_v10 }
 0x21c   : > { %v790_v11 = vpop.f32.mrf.mxu1  ;;  %v983_v12 = vpop.f32.mrf.mxu0 }
 0x21d   : > { %1128 = vst [vmem:[%s2084_s5 + $0x1e0] sm:$0xff] %v790_v11  ;;  %1130 = vst [vmem:[%s2084_s5 + $0x1f0] sm:$0xff] %v983_v12 }
 0x21e   : > { %v792_v13 = vpop.f32.mrf.mxu1  ;;  %v985_v14 = vpop.f32.mrf.mxu0 }
 0x21f   : > { %1129 = vst [vmem:[%s2084_s5 + $0x1e8] sm:$0xff] %v792_v13  ;;  %1131 = vst [vmem:[%s2084_s5 + $0x1f8] sm:$0xff] %v985_v14 }
 0x220   : > { %v796_v15 = vpop.f32.mrf.mxu1  ;;  %v989_v16 = vpop.f32.mrf.mxu0 }
 0x221   : > { %1132 = vst [vmem:[%s2084_s5 + $0x200] sm:$0xff] %v796_v15  ;;  %1134 = vst [vmem:[%s2084_s5 + $0x210] sm:$0xff] %v989_v16 }
 0x222   : > { %v798_v17 = vpop.f32.mrf.mxu1  ;;  %v991_v18 = vpop.f32.mrf.mxu0 }
 0x223   : > { %1133 = vst [vmem:[%s2084_s5 + $0x208] sm:$0xff] %v798_v17  ;;  %1135 = vst [vmem:[%s2084_s5 + $0x218] sm:$0xff] %v991_v18 }
 0x224   : > { %v800_v19 = vpop.f32.mrf.mxu1  ;;  %v993_v20 = vpop.f32.mrf.mxu0 }
 0x225   : > { %1136 = vst [vmem:[%s2084_s5 + $0x220] sm:$0xff] %v800_v19  ;;  %1138 = vst [vmem:[%s2084_s5 + $0x230] sm:$0xff] %v993_v20 }
 0x226   : > { %v802_v21 = vpop.f32.mrf.mxu1  ;;  %v995_v22 = vpop.f32.mrf.mxu0 }
 0x227   : > { %1137 = vst [vmem:[%s2084_s5 + $0x228] sm:$0xff] %v802_v21  ;;  %1139 = vst [vmem:[%s2084_s5 + $0x238] sm:$0xff] %v995_v22 }
 0x228   : > { %v806_v23 = vpop.f32.mrf.mxu1  ;;  %v999_v24 = vpop.f32.mrf.mxu0 }
 0x229   : > { %1140 = vst [vmem:[%s2084_s5 + $0x240] sm:$0xff] %v806_v23  ;;  %1142 = vst [vmem:[%s2084_s5 + $0x250] sm:$0xff] %v999_v24 }
 0x22a   : > { %v808_v25 = vpop.f32.mrf.mxu1  ;;  %v1001_v26 = vpop.f32.mrf.mxu0 }
 0x22b   : > { %1141 = vst [vmem:[%s2084_s5 + $0x248] sm:$0xff] %v808_v25  ;;  %1143 = vst [vmem:[%s2084_s5 + $0x258] sm:$0xff] %v1001_v26 }
 0x22c   : > { %v810_v27 = vpop.f32.mrf.mxu1  ;;  %v1003_v28 = vpop.f32.mrf.mxu0 }
 0x22d   : > { %1144 = vst [vmem:[%s2084_s5 + $0x260] sm:$0xff] %v810_v27  ;;  %1146 = vst [vmem:[%s2084_s5 + $0x270] sm:$0xff] %v1003_v28 }
 0x22e   : > { %v812_v29 = vpop.f32.mrf.mxu1  ;;  %v1005_v30 = vpop.f32.mrf.mxu0 }
 0x22f   : > { %1145 = vst [vmem:[%s2084_s5 + $0x268] sm:$0xff] %v812_v29  ;;  %1147 = vst [vmem:[%s2084_s5 + $0x278] sm:$0xff] %v1005_v30 }
 0x230   : > { %v816_v31 = vpop.f32.mrf.mxu1  ;;  %v1009_v32 = vpop.f32.mrf.mxu0 }
 0x231   : > { %1148 = vst [vmem:[%s2084_s5 + $0x280] sm:$0xff] %v816_v31  ;;  %1150 = vst [vmem:[%s2084_s5 + $0x290] sm:$0xff] %v1009_v32 }
 0x232   : > { %v818_v33 = vpop.f32.mrf.mxu1  ;;  %v1011_v34 = vpop.f32.mrf.mxu0 }
 0x233   : > { %1149 = vst [vmem:[%s2084_s5 + $0x288] sm:$0xff] %v818_v33  ;;  %1151 = vst [vmem:[%s2084_s5 + $0x298] sm:$0xff] %v1011_v34 }
 0x234   : > { %v820_v35 = vpop.f32.mrf.mxu1  ;;  %v1013_v36 = vpop.f32.mrf.mxu0 }
 0x235   : > { %1152 = vst [vmem:[%s2084_s5 + $0x2a0] sm:$0xff] %v820_v35  ;;  %1154 = vst [vmem:[%s2084_s5 + $0x2b0] sm:$0xff] %v1013_v36 }
 0x236   : > { %v822_v37 = vpop.f32.mrf.mxu1  ;;  %v1015_v38 = vpop.f32.mrf.mxu0 }
 0x237   : > { %1153 = vst [vmem:[%s2084_s5 + $0x2a8] sm:$0xff] %v822_v37  ;;  %1155 = vst [vmem:[%s2084_s5 + $0x2b8] sm:$0xff] %v1015_v38 }
 0x238   : > { %v826_v39 = vpop.f32.mrf.mxu1  ;;  %v1019_v40 = vpop.f32.mrf.mxu0 }
 0x239   : > { %1156 = vst [vmem:[%s2084_s5 + $0x2c0] sm:$0xff] %v826_v39  ;;  %1158 = vst [vmem:[%s2084_s5 + $0x2d0] sm:$0xff] %v1019_v40 }
 0x23a   : > { %v828_v41 = vpop.f32.mrf.mxu1  ;;  %v1021_v42 = vpop.f32.mrf.mxu0 }
 0x23b   : > { %1157 = vst [vmem:[%s2084_s5 + $0x2c8] sm:$0xff] %v828_v41  ;;  %1159 = vst [vmem:[%s2084_s5 + $0x2d8] sm:$0xff] %v1021_v42 }
 0x23c   : > { %v830_v43 = vpop.f32.mrf.mxu1  ;;  %v1023_v44 = vpop.f32.mrf.mxu0 }
 0x23d   : > { %1160 = vst [vmem:[%s2084_s5 + $0x2e0] sm:$0xff] %v830_v43  ;;  %1162 = vst [vmem:[%s2084_s5 + $0x2f0] sm:$0xff] %v1023_v44 }
 0x23e   : > { %v832_v45 = vpop.f32.mrf.mxu1  ;;  %v1025_v46 = vpop.f32.mrf.mxu0 }
 0x23f   : > { %1161 = vst [vmem:[%s2084_s5 + $0x2e8] sm:$0xff] %v832_v45  ;;  %1163 = vst [vmem:[%s2084_s5 + $0x2f8] sm:$0xff] %v1025_v46 }
 0x240   : > { %v836_v47 = vpop.f32.mrf.mxu1  ;;  %v1029_v48 = vpop.f32.mrf.mxu0 }
 0x241   : > { %1164 = vst [vmem:[%s2084_s5 + $0x300] sm:$0xff] %v836_v47  ;;  %1166 = vst [vmem:[%s2084_s5 + $0x310] sm:$0xff] %v1029_v48 }
 0x242   : > { %v838_v49 = vpop.f32.mrf.mxu1  ;;  %v1031_v50 = vpop.f32.mrf.mxu0 }
 0x243   : > { %1165 = vst [vmem:[%s2084_s5 + $0x308] sm:$0xff] %v838_v49  ;;  %1167 = vst [vmem:[%s2084_s5 + $0x318] sm:$0xff] %v1031_v50 }
 0x244   : > { %v840_v51 = vpop.f32.mrf.mxu1  ;;  %v1033_v52 = vpop.f32.mrf.mxu0 }
 0x245   : > { %1168 = vst [vmem:[%s2084_s5 + $0x320] sm:$0xff] %v840_v51  ;;  %1170 = vst [vmem:[%s2084_s5 + $0x330] sm:$0xff] %v1033_v52 }
 0x246   : > { %v842_v53 = vpop.f32.mrf.mxu1  ;;  %v1035_v54 = vpop.f32.mrf.mxu0 }
 0x247   : > { %1169 = vst [vmem:[%s2084_s5 + $0x328] sm:$0xff] %v842_v53  ;;  %1171 = vst [vmem:[%s2084_s5 + $0x338] sm:$0xff] %v1035_v54 }
 0x248   : > { %v846_v55 = vpop.f32.mrf.mxu1  ;;  %v1039_v56 = vpop.f32.mrf.mxu0 }
 0x249   : > { %1172 = vst [vmem:[%s2084_s5 + $0x340] sm:$0xff] %v846_v55  ;;  %1174 = vst [vmem:[%s2084_s5 + $0x350] sm:$0xff] %v1039_v56 }
 0x24a   : > { %v848_v57 = vpop.f32.mrf.mxu1  ;;  %v1041_v58 = vpop.f32.mrf.mxu0 }
 0x24b   : > { %1173 = vst [vmem:[%s2084_s5 + $0x348] sm:$0xff] %v848_v57  ;;  %1175 = vst [vmem:[%s2084_s5 + $0x358] sm:$0xff] %v1041_v58 }
 0x24c   : > { %v850_v59 = vpop.f32.mrf.mxu1  ;;  %v1043_v60 = vpop.f32.mrf.mxu0 }
 0x24d   : > { %1176 = vst [vmem:[%s2084_s5 + $0x360] sm:$0xff] %v850_v59  ;;  %1178 = vst [vmem:[%s2084_s5 + $0x370] sm:$0xff] %v1043_v60 }
 0x24e   : > { %v852_v61 = vpop.f32.mrf.mxu1  ;;  %v1045_v62 = vpop.f32.mrf.mxu0 }
 0x24f   : > { %1177 = vst [vmem:[%s2084_s5 + $0x368] sm:$0xff] %v852_v61  ;;  %1179 = vst [vmem:[%s2084_s5 + $0x378] sm:$0xff] %v1045_v62 }
 0x250   : > { %v856_v63 = vpop.f32.mrf.mxu1  ;;  %v1049_v0 = vpop.f32.mrf.mxu0 }
 0x251   : > { %1180 = vst [vmem:[%s2084_s5 + $0x380] sm:$0xff] %v856_v63  ;;  %1182 = vst [vmem:[%s2084_s5 + $0x390] sm:$0xff] %v1049_v0 }
 0x252   : > { %v858_v1 = vpop.f32.mrf.mxu1  ;;  %v1051_v2 = vpop.f32.mrf.mxu0 }
 0x253   : > { %1181 = vst [vmem:[%s2084_s5 + $0x388] sm:$0xff] %v858_v1  ;;  %1183 = vst [vmem:[%s2084_s5 + $0x398] sm:$0xff] %v1051_v2 }
 0x254   : > { %v860_v3 = vpop.f32.mrf.mxu1  ;;  %v1053_v4 = vpop.f32.mrf.mxu0 }
 0x255   : > { %1184 = vst [vmem:[%s2084_s5 + $0x3a0] sm:$0xff] %v860_v3  ;;  %1186 = vst [vmem:[%s2084_s5 + $0x3b0] sm:$0xff] %v1053_v4 }
 0x256   : > { %v862_v5 = vpop.f32.mrf.mxu1  ;;  %v1055_v6 = vpop.f32.mrf.mxu0 }
 0x257   : > { %1185 = vst [vmem:[%s2084_s5 + $0x3a8] sm:$0xff] %v862_v5  ;;  %1187 = vst [vmem:[%s2084_s5 + $0x3b8] sm:$0xff] %v1055_v6 }
 0x258   : > { %v866_v7 = vpop.f32.mrf.mxu1  ;;  %v1059_v8 = vpop.f32.mrf.mxu0 }
 0x259   : > { %1188 = vst [vmem:[%s2084_s5 + $0x3c0] sm:$0xff] %v866_v7  ;;  %1190 = vst [vmem:[%s2084_s5 + $0x3d0] sm:$0xff] %v1059_v8 }
 0x25a   : > { %v868_v9 = vpop.f32.mrf.mxu1  ;;  %v1061_v10 = vpop.f32.mrf.mxu0 }
 0x25b   : > { %1189 = vst [vmem:[%s2084_s5 + $0x3c8] sm:$0xff] %v868_v9  ;;  %1191 = vst [vmem:[%s2084_s5 + $0x3d8] sm:$0xff] %v1061_v10 }
 0x25c   : > { %v870_v11 = vpop.f32.mrf.mxu1  ;;  %v1063_v12 = vpop.f32.mrf.mxu0 }
 0x25d   : > { %1192 = vst [vmem:[%s2084_s5 + $0x3e0] sm:$0xff] %v870_v11  ;;  %1194 = vst [vmem:[%s2084_s5 + $0x3f0] sm:$0xff] %v1063_v12 }
 0x25e   : > { %v872_v13 = vpop.f32.mrf.mxu1  ;;  %v1065_v14 = vpop.f32.mrf.mxu0 }
 0x25f   : > { %1193 = vst [vmem:[%s2084_s5 + $0x3e8] sm:$0xff] %v872_v13  ;;  %1195 = vst [vmem:[%s2084_s5 + $0x3f8] sm:$0xff] %v1065_v14 }
 0x260   : > { %1690 = shalt.err (!%p1687_p6)
}
 0x261   : > { %s1691_s23 = scalar_lea.hbm %s2216_s8, 16384  ;;  %s1695_s5 = scalar_lea.hbm %s2312_s7, 131072 }
 0x262   : > { %p1692_p9 = scmp.ne.s32.totalorder %s2216_s8, %s1691_s23  ;;  %p1696_p0 = scmp.lt.s32.totalorder %s2216_s8, %s2312_s7 }
 0x263   : > { %p1697_p3 = scmp.lt.s32.totalorder %s1695_s5, %s1691_s23 }
 0x264   : > { %p1693_p10 = pnand %p1692_p9, %p2313_p4 }
 0x265   : > { %p1698_p11 = por %p1697_p3, %p1696_p0 }
 0x266   : > { %p1694_p13 = pneg %p1693_p10 }
 0x268   : > { %p1699_p1 = pnand %p1698_p11, %p1694_p13 }
 0x26a   : > { %1702 = shalt.err (!%p1699_p1)
}
 0x26b   : > { %s1811_s10 = smov 512   ;;  %s1812_s18 = smov 32  }
 0x26c   : > { %1481 = dma.vmem_to_hbm [thread:$0]  (%p2313_p4), %s2218_s19, 16384, %s2216_s8, %s2226_s9, %s1811_s10, %s1811_s10, %s1812_s18  }
 0x26d PF: > { %s2314_s24 = sld [smem:[#allocation11_spill]]  ;;  %p1498_p12 = scmp.ge.s32.totalorder %s1801_s22, 2 }
 0x26e   : > { %s2315_s6 = sld [smem:[#allocation13_spill]] }
 0x273   : > { %s1228_s12 = sand.u32 1, %s2314_s24  }
 0x274   : > { %p2316_p2 = scmp.ne.s32.totalorder %s2315_s6, 0  ;;  %s1229_s27 = scalar_lea.sflag [#allocation4], %s1228_s12 }
 0x276   : > { %p1492_p5 = pnand %p1498_p12, %p2316_p2 }
 0x278   : > { %p1493_p7 = pneg %p1492_p5 }
 0x27a   : > { %1756 = dma.done.wait (%p1493_p7), %s1229_s27, 16384  }
 0x27b   : > { %1758 = vsyncadd (%p1493_p7), %s1229_s27, 4294950912  ;;  %s20_s22 = sadd.s32 1, %s1801_s22   ;;  %s2317_s3 = sld [smem:[#allocation14_spill]] }
 0x27c   : > { %p17_p8 = scmp.ge.s32.totalorder %s20_s22, 10   ;;  %s2318_s12 = smov %s1765_s13 }
 0x27d   : > { %s2319_s13 = smov %s1769_s14  ;;  %s2320_s14 = smov %s1951_s2 }
 0x27e   : > { %s2321_s15 = smov %s1777_s16  ;;  %s2322_s16 = smov %s1781_s17 }
 0x27f   : > { %s2323_s17 = smov %s1944_s4  ;;  %s2324_s18 = smov %s1793_s20 }
 0x280   : > { %s2325_s19 = smov %s1797_s21  ;;  %s2327_s21 = smov %s2333_s11 }
 0x281   : > { %s2326_s20 = smov %s2317_s3  ;;  %19 = sbr.rel (!%p17_p8) target bundleno = 13 (0xd), region = 84 }
 0x286   :  { %1234 = vsyncpa [#allocation3], 1 }
 0x287   :  { %1236 = vsyncpa [#allocation3 + $0x1], 1 }
 0x288   :  { %1237 = vsyncpa [#allocation6], 1 }
 0x289   :  { %1238 = vsyncpa [#allocation4], 1 }
 0x28a   :  { %1240 = vsyncpa [#allocation4 + $0x1], 1 }

// kernel: tpu_custom_call.1
= control target key start
LH: loop header
LB: loop body
LE: loop exit
PB: predicated region body
PF: predicated region fallthrough
CT: control target
= control target key end

     0   :  { %s2286_s0 = inlined_call_operand.hbm [shape: f32[4,32,32], index: 0, kind: input, shape index: {}]   ;;  %s2287_s1 = inlined_call_operand.vmem [shape: bf16[512,32], index: 1, kind: input, shape index: {}]   ;;  %s2288_s2 = inlined_call_operand.hbm [shape: bf16[32,512], index: 2, kind: input, shape index: {}]   ;;  %s2289_s3 = inlined_call_operand.hbm [shape: f32[4,512,512], index: 3, kind: output, shape index: {}]  }
   0x1   :  { %2297 = sst [smem:[#allocation15_spill]] %s2288_s2 }
   0x2   :  { %2298 = sst [smem:[#allocation16_spill]] %s2289_s3 }
   0x3   :  { %8 = vsyncpa [#allocation3], 0 }
   0x4   :  { %10 = vsyncpa [#allocation3 + $0x1], 0 }
   0x5   :  { %11 = vsyncpa [#allocation6], 0 }
   0x6   :  { %12 = vsyncpa [#allocation4], 0 }
   0x7   :  { %14 = vsyncpa [#allocation4 + $0x1], 0  ;;  %s1833_s12 = smov 0   ;;  %s1835_s13 = smov 0  }
   0x8   :  { %s1837_s14 = smov 0   ;;  %s1839_s15 = smov 0  }
   0x9   :  { %s1841_s16 = smov 0   ;;  %s1843_s17 = smov 0  }
   0xa   :  { %s1845_s18 = smov 0   ;;  %s1847_s19 = smov 0  }
   0xb   :  { %s1849_s20 = smov 0   ;;  %s1851_s21 = smov 0  }
   0xc   :  { %s1853_s22 = smov 0  }
   0xd LB: > { %2299 = sst [smem:[#allocation11_spill]] %s1761_s12  ;;  %s1322_s23 = sadd.s32 4294967295, %s1801_s22   ;;  %s1801_s22 = sphi %s1853_s22, %s20_s22   ;;  %s1797_s21 = sphi %s1851_s21, %s2327_s21   ;;  %s1793_s20 = sphi %s1849_s20, %s2326_s20   ;;  %s1789_s19 = sphi %s1847_s19, %s2325_s19   ;;  %s1785_s18 = sphi %s1845_s18, %s2324_s18   ;;  %s1781_s17 = sphi %s1843_s17, %s2323_s17   ;;  %s1777_s16 = sphi %s1841_s16, %s2322_s16   ;;  %s1773_s15 = sphi %s1839_s15, %s2321_s15   ;;  %s1769_s14 = sphi %s1837_s14, %s2320_s14   ;;  %s1765_s13 = sphi %s1835_s13, %s2319_s13   ;;  %s1761_s12 = sphi %s1833_s12, %s2318_s12  }
   0xe   : > { %s1323_s24 = sadd.s32 4294967294, %s1801_s22   ;;  %p52_p0 = scmp.ne.s32.totalorder %s1777_s16, %s1773_s15 }
   0xf   : > { %p1889_p1 = scmp.eq.s32.totalorder %s1322_s23, 0  ;;  %p124_p2 = scmp.ne.s32.totalorder %s1769_s14, %s1765_s13 }
  0x10   : > { %p125_p3 = scmp.eq.s32.totalorder %s1322_s23, 7  ;;  %p130_p5 = scmp.ne.s32.totalorder %s1765_s13, %s1761_s12 }
  0x11   : > { %p1897_p4 = por %p1889_p1, %p52_p0  ;;  %p131_p7 = scmp.eq.s32.totalorder %s1323_s24, 7 }
  0x12   : > { %p1903_p6 = por %p125_p3, %p124_p2  ;;  %p1324_p8 = scmp.ge.s32.totalorder %s1801_s22, 1 }
  0x13   : > { %p138_p9 = scmp.lt.s32.totalorder %s1801_s22, 9  ;;  %p1909_p10 = por %p131_p7, %p130_p5 }
  0x14   : > { %s2302_s27 = scalar_select %p1903_p6, 1, 0 }
  0x15   : > { %s2304_s28 = scalar_select %p1909_p10, 1, 0 }
  0x16   : > { %2303 = sst [smem:[#allocation12_spill]] %s2302_s27  ;;  %p1913_p11 = pnand %p1324_p8, %p138_p9 }
  0x17   : > { %2305 = sst [smem:[#allocation13_spill]] %s2304_s28  ;;  %s1803_s30 = smov [#allocation5]  }
  0x18   : > { %s150_s4 = sshll.u32 %s1803_s30, 4  ;;  %p1483_p12 = pneg %p1913_p11  ;;  %s151_s4 = int_to_ptr.vmem [resolvable:$true] %s150_s4 }
  0x19   : > { %s1634_s5 = scalar_lea.vmem %s151_s4, 1024  ;;  %p1642_p7 = scmp.lt.s32.totalorder %s151_s4, %s151_s4 }
  0x1a   : > { %p1484_p13 = pnand %p1483_p12, %p1889_p1  ;;  %p1635_p2 = scmp.ne.s32.totalorder %s151_s4, %s1634_s5 }
  0x1b   : > { %p1643_p6 = scmp.lt.s32.totalorder %s1634_s5, %s1634_s5 }
  0x1c   : > { %p1625_p0 = pneg %p1484_p13 }
  0x1d   : > { %p1644_p10 = por %p1643_p6, %p1642_p7 }
  0x1e   : > { %p1637_p3 = pnand %p1635_p2, %p1625_p0 }
  0x20   : > { %p1638_p5 = pneg %p1637_p3 }
  0x22   : > { %p1645_p8 = pnand %p1644_p10, %p1638_p5 }
  0x24   : > { %1648 = shalt.err (!%p1645_p8)
}
  0x25   : > { %s1804_s6 = smov 256   ;;  %s1805_s7 = smov 16  }
  0x26   : > { %s2307_s2 = sld [smem:[#allocation15_spill]]  ;;  %s29_s10 = sadd.s32 1, %s1793_s20 }
  0x27   : > { %s32_s11 = sadd.s32 1, %s1797_s21  ;;  %p30_p6 = scmp.ge.s32.totalorder %s29_s10, 4 }
  0x28   : > { %s39_s15 = sadd.s32 1, %s1781_s17  ;;  %p46_p9 = scmp.ne.s32.totalorder %s1781_s17, %s1777_s16 }
  0x29   : > { %p47_p10 = scmp.eq.s32.totalorder %s1801_s22, 0  ;;  %s2329_s10 = smov (%p30_p6, %s29_s10), 0 }
  0x2a   : > { %2308 = sst [smem:[#allocation14_spill]] %s2329_s10  ;;  %s2331_s11 = smov (!%p30_p6, %s32_s11), %s1797_s21 }
  0x2b   : > { %s36_s23 = ssub.s32 %s1793_s20, %s2329_s10  ;;  %p1935_p12 = por %p47_p10, %p46_p9 }
  0x2c   : > { %1486 = dma.hbm_to_vmem [thread:$0]  (!%p1484_p13), %s2307_s2, 1024, %s151_s4, [#allocation6], %s1804_s6, %s1804_s6, %s1805_s7  }
  0x2d   : > { %p34_p13 = scmp.ge.s32.totalorder %s2331_s11, 2  ;;  %p37_p0 = scmp.eq.s32.totalorder %s36_s23, 0 }
  0x2e   : > { %s114_s30 = sadd.s32 1, %s1769_s14  ;;  %p1496_p2 = scmp.lt.s32.totalorder %s1801_s22, 8 }
  0x2f   : > { %s2333_s11 = smov (%p34_p13, %s2331_s11), 0  ;;  %s164_s6 = sand.u32 1, %s1781_s17  }
  0x30   : > { %s1944_s4 = scalar_select %p37_p0, %s1781_s17, %s39_s15  }
  0x31   : > { %s110_s5 = ssub.s32 %s1797_s21, %s2333_s11  ;;  %s1327_s8 = sshll.u32 %s164_s6, 5 }
  0x32   : > { %s111_s7 = sor.u32 %s110_s5, %s36_s23  ;;  %s1415_s9 = sshll.u32 %s1793_s20, 9 }
  0x33   : > { %p112_p3 = scmp.eq.s32.totalorder %s111_s7, 0  ;;  %s174_s12 = scalar_lea.hbm %s2286_s0, %s1415_s9 }
  0x34   : > { %s168_s3 = scalar_lea.vmem [#allocation2], %s1327_s8  ;;  %p1960_p5 = pnand %p1496_p2, %p1935_p12 }
  0x35   : > { %s1951_s2 = scalar_select %p112_p3, %s1769_s14, %s114_s30  }
  0x36   : > { %s175_s27 = sshll.u32 %s168_s3, 4  ;;  %s165_s23 = scalar_lea.sflag [#allocation3], %s164_s6  ;;  %s176_s27 = int_to_ptr.vmem [resolvable:$true] %s175_s27 }
  0x37   : > { %p1651_p7 = pneg %p1960_p5  ;;  %s1662_s5 = scalar_lea.vmem %s176_s27, 512 }
  0x38   : > { %p1663_p8 = scmp.ne.s32.totalorder %s176_s27, %s1662_s5  ;;  %s1806_s30 = smov [#allocation2]  }
  0x39   : > { %s1667_s28 = sshll.u32 %s1806_s30, 4  ;;  %s1668_s28 = int_to_ptr.vmem [resolvable:$false] %s1667_s28 }
  0x3a   : > { %p1665_p6 = pnand %p1663_p8, %p1651_p7  ;;  %s1669_s10 = scalar_lea.vmem %s1668_s28, 1024 }
  0x3b   : > { %p1670_p10 = scmp.lt.s32.totalorder %s176_s27, %s1668_s28  ;;  %p1671_p13 = scmp.lt.s32.totalorder %s1669_s10, %s1662_s5 }
  0x3c   : > { %p1666_p9 = pneg %p1665_p6 }
  0x3d   : > { %p1672_p0 = por %p1671_p13, %p1670_p10 }
  0x3f   : > { %p1673_p3 = pnand %p1672_p0, %p1666_p9 }
  0x41   : > { %1676 = shalt.err (!%p1673_p3)
}
  0x42   : > { %s1807_s3 = smov 128   ;;  %s1808_s24 = smov 8  }
  0x43   : > { %1490 = dma.hbm_to_vmem [thread:$0]  (!%p1960_p5), %s174_s12, 512, %s176_s27, %s165_s23, %s1807_s3, %s1807_s3, %s1808_s24  }
  0x44   : > { %196 = sbr.rel (%p1913_p11) target bundleno = 621 (0x26d), region = 32  ;;  %s198_s6 = sand.u32 (!%p1913_p11), 1, %s1777_s16  }
  0x45   : > { %s1331_s7 = sshll.u32 (!%p1913_p11), %s198_s6, 5  ;;  %s199_s8 = scalar_lea.sflag (!%p1913_p11), [#allocation3], %s198_s6 }
  0x46   : > { %s202_s9 = scalar_lea.vmem (!%p1913_p11), [#allocation2], %s1331_s7 }
  0x49   : > { %1748 = dma.done.wait (%p1897_p4), %s199_s8, 512  }
  0x4a   : > { %1750 = vsyncadd (%p1897_p4), %s199_s8, 4294966784 }
  0x4b   : > { %1752 = dma.done.wait (%p1889_p1), [#allocation6], 1024  }
  0x4c   : > { %1754 = vsyncadd (%p1889_p1), [#allocation6], 4294966272  ;;  %s1334_s12 = sshll.u32 %s1789_s19, 5  ;;  %v244_v0 = vld [vmem:[%s202_s9 + $0x10] sm:$0xff]  ;;  %v245_v1 = vld [vmem:[%s202_s9 + $0x18] sm:$0xff]  ;;  %vm360_vm0 = vcmask 261120  }
  0x4d   : > { %p235_p11 = scmp.lt.s32.totalorder %s1334_s12, 63  ;;  %v242_v2 = vld [vmem:[%s202_s9] sm:$0xff]  ;;  %v247_v3 = vpack.c.bf16 %v245_v1, %v244_v0  ;;  %v243_v4 = vld [vmem:[%s202_s9 + $0x8] sm:$0xff]  ;;  %v1809_v30 = vmov 0   ;;  %s231_s25 = sand.u32 1, %s1765_s13  }
  0x4e   : > { %v246_v5 = vpack.c.bf16 %v243_v4, %v242_v2  ;;  %v1611_v16 = vld [vmem:[#allocation5 + $0x20] ss:$16 sps:$4 sm:$0xff]   ;;  %v1613_v17 = vld [vmem:[#allocation5 + $0x24] ss:$16 sps:$4 sm:$0xff]   ;;  %v1614_v18 = vld [vmem:[#allocation5 + $0x28] ss:$16 sps:$4 sm:$0xff]  }
  0x4f   : > { %s2335_s12 = smov (!%p235_p11, %s1334_s12), 63  ;;  %1435 = vmatprep.subr.bf16.mxu0 %v247_v3  ;;  %1471 = vmatprep.subr.bf16.mxu1 %v247_v3  ;;  %v1616_v19 = vld [vmem:[#allocation5 + $0x2c] ss:$16 sps:$4 sm:$0xff]   ;;  %v1619_v20 = vld [vmem:[#allocation5 + $0x4] ss:$16 sps:$4 sm:$0xff]   ;;  %s1333_s26 = sshll.u32 %s231_s25, 10 }
  0x50   : > { %s1335_s27 = sshll.u32 %s2335_s12, 2  ;;  %1436 = vmatpush3.bf16.msra.mxu0 %v247_v3  ;;  %1473 = vmatpush3.bf16.msra.mxu1 %v247_v3  ;;  %v1617_v21 = vld [vmem:[#allocation5] ss:$16 sps:$4 sm:$0xff]   ;;  %v1622_v22 = vld [vmem:[#allocation5 + $0xc] ss:$16 sps:$4 sm:$0xff]   ;;  %s2084_s5 = scalar_lea.vmem [#allocation7], %s1333_s26 }
  0x51   : > { %s1983_s23 = scalar_lea.vmem %s2287_s1, %s1335_s27  ;;  %1437 = vmatprep.subr.bf16.mxu0 %v246_v5  ;;  %1472 = vmatprep.subr.bf16.mxu1 %v246_v5  ;;  %v1620_v25 = vld [vmem:[#allocation5 + $0x8] ss:$16 sps:$4 sm:$0xff]   ;;  %s1416_s30 = sshll.u32 %s1789_s19, 7 }
  0x52   : > { %v1595_v6 = vld [vmem:[%s1983_s23] sm:$0xff]   ;;  %v1596_v7 = vld [vmem:[%s1983_s23 + $0x8] sm:$0xff]   ;;  %v1597_v8 = vld [vmem:[%s1983_s23 + $0x10] sm:$0xff]   ;;  %s1411_s28 = sshll.u32 %s1785_s18, 8  ;;  %s1213_s19 = sshll.u32 %s2084_s5, 4  ;;  %s2218_s19 = int_to_ptr.vmem [resolvable:$true] %s1213_s19 }
  0x53   : > { %1439 = vmatprep.mubr.msk.bf16.mxu0 %vm360_vm0, %v1595_v6  ;;  %v1603_v9 = vld [vmem:[%s1983_s23 + $0x40] sm:$0xff]   ;;  %v1604_v10 = vld [vmem:[%s1983_s23 + $0x48] sm:$0xff]   ;;  %v1605_v11 = vld [vmem:[%s1983_s23 + $0x50] sm:$0xff]   ;;  %s1210_s10 = sadd.s32 %s1416_s30, %s1411_s28  ;;  %s2311_s3 = sld [smem:[#allocation12_spill]] }
  0x54   : > { %1438 = vmatpush3.bf16.msra.mxu0 %v246_v5  ;;  %1474 = vmatpush3.bf16.msra.mxu1 %v246_v5  ;;  %v1598_v12 = vld [vmem:[%s1983_s23 + $0x18] sm:$0xff]   ;;  %v1599_v13 = vld [vmem:[%s1983_s23 + $0x20] sm:$0xff]   ;;  %v1600_v23 = vld [vmem:[%s1983_s23 + $0x28] sm:$0xff]   ;;  %s1412_s18 = sshll.u32 %s1210_s10, 7  ;;  %s2312_s7 = sld [smem:[#allocation16_spill]] }
  0x55   : > { %1455 = vmatprep.mubr.msk.bf16.mxu1 %vm360_vm0, %v1603_v9  ;;  %v1606_v14 = vld [vmem:[%s1983_s23 + $0x58] sm:$0xff]   ;;  %v1607_v15 = vld [vmem:[%s1983_s23 + $0x60] sm:$0xff]   ;;  %694 = vmatprep.subr.bf16.mxu1 %v1613_v17  ;;  %v1601_v24 = vld [vmem:[%s1983_s23 + $0x30] sm:$0xff]   ;;  %s2226_s9 = scalar_lea.sflag [#allocation4], %s231_s25  ;;  %s1677_s12 = scalar_lea.vmem %s2218_s19, 16384 }
  0x56   : > { %887 = vmatprep.subr.bf16.mxu0 %v1616_v19  ;;  %v1608_v26 = vld [vmem:[%s1983_s23 + $0x68] sm:$0xff]   ;;  %v1609_v27 = vld [vmem:[%s1983_s23 + $0x70] sm:$0xff]   ;;  %v1602_v28 = vld [vmem:[%s1983_s23 + $0x38] sm:$0xff]   ;;  %p1678_p1 = scmp.ne.s32.totalorder %s2218_s19, %s1677_s12  ;;  %s1810_s27 = smov [#allocation7]  }
  0x57   : > { %1440 = vmatmul.mubr.msk.bf16.vlgmr.msra.gmra.mxu0 %vm360_vm0, %v1596_v7  ;;  %1456 = vmatmul.mubr.msk.bf16.vlgmr.msra.gmra.mxu1 %vm360_vm0, %v1604_v10  ;;  %v1610_v29 = vld [vmem:[%s1983_s23 + $0x78] sm:$0xff]   ;;  %s1681_s29 = sshll.u32 %s1810_s27, 4  ;;  %s1682_s29 = int_to_ptr.vmem [resolvable:$false] %s1681_s29 }
  0x58   : > { %1443 = vmatprep.mubr.msk.bf16.mxu0 %vm360_vm0, %v1597_v8  ;;  %1459 = vmatprep.mubr.msk.bf16.mxu1 %vm360_vm0, %v1605_v11  ;;  %s1683_s15 = scalar_lea.vmem %s1682_s29, 32768  ;;  %p1684_p5 = scmp.lt.s32.totalorder %s2218_s19, %s1682_s29 }
  0x59   : > { %695 = vmatpush1.bf16.msra.mxu1 %v1611_v16  ;;  %888 = vmatpush1.bf16.msra.mxu0 %v1614_v18  ;;  %p2313_p4 = scmp.ne.s32.totalorder %s2311_s3, 0  ;;  %p1685_p7 = scmp.lt.s32.totalorder %s1683_s15, %s1677_s12 }
  0x5a   : > { %696 = vmatprep.subr.bf16.mxu1 %v1619_v20  ;;  %889 = vmatprep.subr.bf16.mxu0 %v1622_v22  ;;  %s2216_s8 = scalar_lea.hbm %s2312_s7, %s1412_s18 }
  0x5b   : > { %p1679_p12 = pnand %p1678_p1, %p2313_p4  ;;  %p1686_p8 = por %p1685_p7, %p1684_p5 }
  0x5d   : > { %697 = vmatpush1.bf16.msra.mxu1 %v1617_v21  ;;  %890 = vmatpush1.bf16.msra.mxu0 %v1620_v25  ;;  %p1680_p2 = pneg %p1679_p12 }
  0x5f   : > { %1444 = vmatmul.mubr.msk.bf16.gmra.mxu0 %vm360_vm0, %v1598_v12  ;;  %1460 = vmatmul.mubr.msk.bf16.gmra.mxu1 %vm360_vm0, %v1606_v14  ;;  %p1687_p6 = pnand %p1686_p8, %p1680_p2 }
  0x60   : > { %1447 = vmatprep.mubr.msk.bf16.mxu0 %vm360_vm0, %v1599_v13  ;;  %1463 = vmatprep.mubr.msk.bf16.mxu1 %vm360_vm0, %v1607_v15 }
  0x67   : > { %1448 = vmatmul.mubr.msk.bf16.gmra.mxu0 %vm360_vm0, %v1600_v23  ;;  %1464 = vmatmul.mubr.msk.bf16.gmra.mxu1 %vm360_vm0, %v1608_v26 }
  0x68   : > { %1451 = vmatprep.mubr.msk.bf16.mxu0 %vm360_vm0, %v1601_v24  ;;  %1467 = vmatprep.mubr.msk.bf16.mxu1 %vm360_vm0, %v1609_v27 }
  0x6f   : > { %1452 = vmatmul.mubr.msk.bf16.gmra.mxu0 %vm360_vm0, %v1602_v28  ;;  %1468 = vmatmul.mubr.msk.bf16.gmra.mxu1 %vm360_vm0, %v1610_v29 }
  0x70   : > { %714 = vmatprep.mubr.bf16.mxu1 %v1809_v30  ;;  %907 = vmatprep.mubr.bf16.mxu0 %v1809_v30 }
 0x117   : > { %v1441_v31 = vpop.f32.mrf.mxu0  ;;  %v1457_v54 = vpop.f32.mrf.mxu1 }
 0x119   : > { %v443_v32 = vpop.f32.mrf.mxu0  ;;  %v507_v55 = vpop.f32.mrf.mxu1 }
 0x11b   : > { %v1442_v33 = vpop.f32.mrf.mxu0  ;;  %v1458_v57 = vpop.f32.mrf.mxu1 }
 0x11c   : > { %v571_v38 = vpack.c.bf16 %v1442_v33, %v1441_v31  ;;  %v579_v62 = vpack.c.bf16 %v1458_v57, %v1457_v54 }
 0x11d   : > { %v446_v34 = vpop.f32.mrf.mxu0  ;;  %v510_v58 = vpop.f32.mrf.mxu1 }
 0x11e   : > { %v570_v35 = vpack.c.bf16 %v446_v34, %v443_v32  ;;  %v578_v59 = vpack.c.bf16 %v510_v58, %v507_v55 }
 0x11f   : > { %v1445_v36 = vpop.f32.mrf.mxu0  ;;  %v1461_v60 = vpop.f32.mrf.mxu1 }
 0x120   : > { %1376 = vmatmul.mubr.msk.bf16.vlgmr.msra.gmra.mxu1 %vm360_vm0, %v570_v35  ;;  %1392 = vmatmul.mubr.msk.bf16.vlgmr.msra.gmra.mxu0 %vm360_vm0, %v570_v35 }
 0x121   : > { %724 = vmatprep.mubr.bf16.mxu1 %v1809_v30  ;;  %917 = vmatprep.mubr.bf16.mxu0 %v1809_v30  ;;  %v459_v37 = vpop.f32.mrf.mxu0  ;;  %v523_v61 = vpop.f32.mrf.mxu1 }
 0x123   : > { %v1446_v39 = vpop.f32.mrf.mxu0  ;;  %v1462_v63 = vpop.f32.mrf.mxu1 }
 0x124   : > { %v573_v44 = vpack.c.bf16 %v1446_v39, %v1445_v36  ;;  %v581_v4 = vpack.c.bf16 %v1462_v63, %v1461_v60 }
 0x125   : > { %v462_v40 = vpop.f32.mrf.mxu0  ;;  %v526_v0 = vpop.f32.mrf.mxu1 }
 0x126   : > { %v572_v41 = vpack.c.bf16 %v462_v40, %v459_v37  ;;  %v580_v1 = vpack.c.bf16 %v526_v0, %v523_v61 }
 0x127   : > { %v1449_v42 = vpop.f32.mrf.mxu0  ;;  %v1465_v2 = vpop.f32.mrf.mxu1 }
 0x128   : > { %1377 = vmatmul.mubr.msk.bf16.gmra.mxu1 %vm360_vm0, %v571_v38  ;;  %1393 = vmatmul.mubr.msk.bf16.gmra.mxu0 %vm360_vm0, %v571_v38 }
 0x129   : > { %734 = vmatprep.mubr.bf16.mxu1 %v1809_v30  ;;  %927 = vmatprep.mubr.bf16.mxu0 %v1809_v30  ;;  %v475_v43 = vpop.f32.mrf.mxu0  ;;  %v539_v3 = vpop.f32.mrf.mxu1 }
 0x12b   : > { %v1450_v45 = vpop.f32.mrf.mxu0  ;;  %v1466_v5 = vpop.f32.mrf.mxu1 }
 0x12c   : > { %v575_v50 = vpack.c.bf16 %v1450_v45, %v1449_v42  ;;  %v583_v10 = vpack.c.bf16 %v1466_v5, %v1465_v2 }
 0x12d   : > { %v478_v46 = vpop.f32.mrf.mxu0  ;;  %v542_v6 = vpop.f32.mrf.mxu1 }
 0x12e   : > { %v574_v47 = vpack.c.bf16 %v478_v46, %v475_v43  ;;  %v582_v7 = vpack.c.bf16 %v542_v6, %v539_v3 }
 0x12f   : > { %v1453_v48 = vpop.f32.mrf.mxu0  ;;  %v1469_v8 = vpop.f32.mrf.mxu1 }
 0x130   : > { %1378 = vmatmul.mubr.msk.bf16.gmra.mxu1 %vm360_vm0, %v572_v41  ;;  %1394 = vmatmul.mubr.msk.bf16.gmra.mxu0 %vm360_vm0, %v572_v41 }
 0x131   : > { %744 = vmatprep.mubr.bf16.mxu1 %v1809_v30  ;;  %937 = vmatprep.mubr.bf16.mxu0 %v1809_v30  ;;  %v491_v49 = vpop.f32.mrf.mxu0  ;;  %v555_v9 = vpop.f32.mrf.mxu1 }
 0x133   : > { %v1454_v51 = vpop.f32.mrf.mxu0  ;;  %v1470_v11 = vpop.f32.mrf.mxu1 }
 0x134   : > { %v577_v56 = vpack.c.bf16 %v1454_v51, %v1453_v48  ;;  %v585_v14 = vpack.c.bf16 %v1470_v11, %v1469_v8 }
 0x135   : > { %v494_v52 = vpop.f32.mrf.mxu0  ;;  %v558_v12 = vpop.f32.mrf.mxu1 }
 0x136   : > { %v576_v53 = vpack.c.bf16 %v494_v52, %v491_v49  ;;  %v584_v13 = vpack.c.bf16 %v558_v12, %v555_v9 }
 0x138   : > { %1379 = vmatmul.mubr.msk.bf16.gmra.mxu1 %vm360_vm0, %v573_v44  ;;  %1395 = vmatmul.mubr.msk.bf16.gmra.mxu0 %vm360_vm0, %v573_v44 }
 0x139   : > { %754 = vmatprep.mubr.bf16.mxu1 %v1809_v30  ;;  %947 = vmatprep.mubr.bf16.mxu0 %v1809_v30 }
 0x140   : > { %1380 = vmatmul.mubr.msk.bf16.gmra.mxu1 %vm360_vm0, %v574_v47  ;;  %1396 = vmatmul.mubr.msk.bf16.gmra.mxu0 %vm360_vm0, %v574_v47 }
 0x141   : > { %764 = vmatprep.mubr.bf16.mxu1 %v1809_v30  ;;  %957 = vmatprep.mubr.bf16.mxu0 %v1809_v30 }
 0x148   : > { %1381 = vmatmul.mubr.msk.bf16.gmra.mxu1 %vm360_vm0, %v575_v50  ;;  %1397 = vmatmul.mubr.msk.bf16.gmra.mxu0 %vm360_vm0, %v575_v50 }
 0x149   : > { %774 = vmatprep.mubr.bf16.mxu1 %v1809_v30  ;;  %967 = vmatprep.mubr.bf16.mxu0 %v1809_v30 }
 0x150   : > { %1382 = vmatmul.mubr.msk.bf16.gmra.mxu1 %vm360_vm0, %v576_v53  ;;  %1398 = vmatmul.mubr.msk.bf16.gmra.mxu0 %vm360_vm0, %v576_v53 }
 0x151   : > { %784 = vmatprep.mubr.bf16.mxu1 %v1809_v30  ;;  %977 = vmatprep.mubr.bf16.mxu0 %v1809_v30 }
 0x158   : > { %1383 = vmatmul.mubr.msk.bf16.gmra.mxu1 %vm360_vm0, %v577_v56  ;;  %1399 = vmatmul.mubr.msk.bf16.gmra.mxu0 %vm360_vm0, %v577_v56 }
 0x159   : > { %794 = vmatprep.mubr.bf16.mxu1 %v1809_v30  ;;  %987 = vmatprep.mubr.bf16.mxu0 %v1809_v30 }
 0x160   : > { %1384 = vmatmul.mubr.msk.bf16.gmra.mxu1 %vm360_vm0, %v578_v59  ;;  %1400 = vmatmul.mubr.msk.bf16.gmra.mxu0 %vm360_vm0, %v578_v59 }
 0x161   : > { %804 = vmatprep.mubr.bf16.mxu1 %v1809_v30  ;;  %997 = vmatprep.mubr.bf16.mxu0 %v1809_v30 }
 0x168   : > { %1385 = vmatmul.mubr.msk.bf16.gmra.mxu1 %vm360_vm0, %v579_v62  ;;  %1401 = vmatmul.mubr.msk.bf16.gmra.mxu0 %vm360_vm0, %v579_v62 }
 0x169   : > { %814 = vmatprep.mubr.bf16.mxu1 %v1809_v30  ;;  %1007 = vmatprep.mubr.bf16.mxu0 %v1809_v30 }
 0x170   : > { %1386 = vmatmul.mubr.msk.bf16.gmra.mxu1 %vm360_vm0, %v580_v1  ;;  %1402 = vmatmul.mubr.msk.bf16.gmra.mxu0 %vm360_vm0, %v580_v1 }
 0x171   : > { %824 = vmatprep.mubr.bf16.mxu1 %v1809_v30  ;;  %1017 = vmatprep.mubr.bf16.mxu0 %v1809_v30 }
 0x178   : > { %1387 = vmatmul.mubr.msk.bf16.gmra.mxu1 %vm360_vm0, %v581_v4  ;;  %1403 = vmatmul.mubr.msk.bf16.gmra.mxu0 %vm360_vm0, %v581_v4 }
 0x179   : > { %834 = vmatprep.mubr.bf16.mxu1 %v1809_v30  ;;  %1027 = vmatprep.mubr.bf16.mxu0 %v1809_v30 }
 0x180   : > { %1388 = vmatmul.mubr.msk.bf16.gmra.mxu1 %vm360_vm0, %v582_v7  ;;  %1404 = vmatmul.mubr.msk.bf16.gmra.mxu0 %vm360_vm0, %v582_v7 }
 0x181   : > { %844 = vmatprep.mubr.bf16.mxu1 %v1809_v30  ;;  %1037 = vmatprep.mubr.bf16.mxu0 %v1809_v30 }
 0x188   : > { %1389 = vmatmul.mubr.msk.bf16.gmra.mxu1 %vm360_vm0, %v583_v10  ;;  %1405 = vmatmul.mubr.msk.bf16.gmra.mxu0 %vm360_vm0, %v583_v10 }
 0x189   : > { %854 = vmatprep.mubr.bf16.mxu1 %v1809_v30  ;;  %1047 = vmatprep.mubr.bf16.mxu0 %v1809_v30 }
 0x190   : > { %1390 = vmatmul.mubr.msk.bf16.gmra.mxu1 %vm360_vm0, %v584_v13  ;;  %1406 = vmatmul.mubr.msk.bf16.gmra.mxu0 %vm360_vm0, %v584_v13 }
 0x191   : > { %864 = vmatprep.mubr.bf16.mxu1 %v1809_v30  ;;  %1057 = vmatprep.mubr.bf16.mxu0 %v1809_v30 }
 0x198   : > { %1391 = vmatmul.mubr.msk.bf16.gmra.mxu1 %vm360_vm0, %v585_v14  ;;  %1407 = vmatmul.mubr.msk.bf16.gmra.mxu0 %vm360_vm0, %v585_v14 }
 0x1e0   : > { %v716_v15 = vpop.f32.mrf.mxu1  ;;  %v909_v16 = vpop.f32.mrf.mxu0 }
 0x1e1   : > { %1068 = vst [vmem:[%s2084_s5] sm:$0xff] %v716_v15  ;;  %1070 = vst [vmem:[%s2084_s5 + $0x10] sm:$0xff] %v909_v16 }
 0x1e2   : > { %v718_v17 = vpop.f32.mrf.mxu1  ;;  %v911_v18 = vpop.f32.mrf.mxu0 }
 0x1e3   : > { %1069 = vst [vmem:[%s2084_s5 + $0x8] sm:$0xff] %v718_v17  ;;  %1071 = vst [vmem:[%s2084_s5 + $0x18] sm:$0xff] %v911_v18 }
 0x1e4   : > { %v720_v19 = vpop.f32.mrf.mxu1  ;;  %v913_v20 = vpop.f32.mrf.mxu0 }
 0x1e5   : > { %1072 = vst [vmem:[%s2084_s5 + $0x20] sm:$0xff] %v720_v19  ;;  %1074 = vst [vmem:[%s2084_s5 + $0x30] sm:$0xff] %v913_v20 }
 0x1e6   : > { %v722_v21 = vpop.f32.mrf.mxu1  ;;  %v915_v22 = vpop.f32.mrf.mxu0 }
 0x1e7   : > { %1073 = vst [vmem:[%s2084_s5 + $0x28] sm:$0xff] %v722_v21  ;;  %1075 = vst [vmem:[%s2084_s5 + $0x38] sm:$0xff] %v915_v22 }
 0x1e8   : > { %v726_v23 = vpop.f32.mrf.mxu1  ;;  %v919_v24 = vpop.f32.mrf.mxu0 }
 0x1e9   : > { %1076 = vst [vmem:[%s2084_s5 + $0x40] sm:$0xff] %v726_v23  ;;  %1078 = vst [vmem:[%s2084_s5 + $0x50] sm:$0xff] %v919_v24 }
 0x1ea   : > { %v728_v25 = vpop.f32.mrf.mxu1  ;;  %v921_v26 = vpop.f32.mrf.mxu0 }
 0x1eb   : > { %1077 = vst [vmem:[%s2084_s5 + $0x48] sm:$0xff] %v728_v25  ;;  %1079 = vst [vmem:[%s2084_s5 + $0x58] sm:$0xff] %v921_v26 }
 0x1ec   : > { %v730_v27 = vpop.f32.mrf.mxu1  ;;  %v923_v28 = vpop.f32.mrf.mxu0 }
 0x1ed   : > { %1080 = vst [vmem:[%s2084_s5 + $0x60] sm:$0xff] %v730_v27  ;;  %1082 = vst [vmem:[%s2084_s5 + $0x70] sm:$0xff] %v923_v28 }
 0x1ee   : > { %v732_v29 = vpop.f32.mrf.mxu1  ;;  %v925_v30 = vpop.f32.mrf.mxu0 }
 0x1ef   : > { %1081 = vst [vmem:[%s2084_s5 + $0x68] sm:$0xff] %v732_v29  ;;  %1083 = vst [vmem:[%s2084_s5 + $0x78] sm:$0xff] %v925_v30 }
 0x1f0   : > { %v736_v31 = vpop.f32.mrf.mxu1  ;;  %v929_v32 = vpop.f32.mrf.mxu0 }
 0x1f1   : > { %1084 = vst [vmem:[%s2084_s5 + $0x80] sm:$0xff] %v736_v31  ;;  %1086 = vst [vmem:[%s2084_s5 + $0x90] sm:$0xff] %v929_v32 }
 0x1f2   : > { %v738_v33 = vpop.f32.mrf.mxu1  ;;  %v931_v34 = vpop.f32.mrf.mxu0 }
 0x1f3   : > { %1085 = vst [vmem:[%s2084_s5 + $0x88] sm:$0xff] %v738_v33  ;;  %1087 = vst [vmem:[%s2084_s5 + $0x98] sm:$0xff] %v931_v34 }
 0x1f4   : > { %v740_v35 = vpop.f32.mrf.mxu1  ;;  %v933_v36 = vpop.f32.mrf.mxu0 }
 0x1f5   : > { %1088 = vst [vmem:[%s2084_s5 + $0xa0] sm:$0xff] %v740_v35  ;;  %1090 = vst [vmem:[%s2084_s5 + $0xb0] sm:$0xff] %v933_v36 }
 0x1f6   : > { %v742_v37 = vpop.f32.mrf.mxu1  ;;  %v935_v38 = vpop.f32.mrf.mxu0 }
 0x1f7   : > { %1089 = vst [vmem:[%s2084_s5 + $0xa8] sm:$0xff] %v742_v37  ;;  %1091 = vst [vmem:[%s2084_s5 + $0xb8] sm:$0xff] %v935_v38 }
 0x1f8   : > { %v746_v39 = vpop.f32.mrf.mxu1  ;;  %v939_v40 = vpop.f32.mrf.mxu0 }
 0x1f9   : > { %1092 = vst [vmem:[%s2084_s5 + $0xc0] sm:$0xff] %v746_v39  ;;  %1094 = vst [vmem:[%s2084_s5 + $0xd0] sm:$0xff] %v939_v40 }
 0x1fa   : > { %v748_v41 = vpop.f32.mrf.mxu1  ;;  %v941_v42 = vpop.f32.mrf.mxu0 }
 0x1fb   : > { %1093 = vst [vmem:[%s2084_s5 + $0xc8] sm:$0xff] %v748_v41  ;;  %1095 = vst [vmem:[%s2084_s5 + $0xd8] sm:$0xff] %v941_v42 }
 0x1fc   : > { %v750_v43 = vpop.f32.mrf.mxu1  ;;  %v943_v44 = vpop.f32.mrf.mxu0 }
 0x1fd   : > { %1096 = vst [vmem:[%s2084_s5 + $0xe0] sm:$0xff] %v750_v43  ;;  %1098 = vst [vmem:[%s2084_s5 + $0xf0] sm:$0xff] %v943_v44 }
 0x1fe   : > { %v752_v45 = vpop.f32.mrf.mxu1  ;;  %v945_v46 = vpop.f32.mrf.mxu0 }
 0x1ff   : > { %1097 = vst [vmem:[%s2084_s5 + $0xe8] sm:$0xff] %v752_v45  ;;  %1099 = vst [vmem:[%s2084_s5 + $0xf8] sm:$0xff] %v945_v46 }
 0x200   : > { %v756_v47 = vpop.f32.mrf.mxu1  ;;  %v949_v48 = vpop.f32.mrf.mxu0 }
 0x201   : > { %1100 = vst [vmem:[%s2084_s5 + $0x100] sm:$0xff] %v756_v47  ;;  %1102 = vst [vmem:[%s2084_s5 + $0x110] sm:$0xff] %v949_v48 }
 0x202   : > { %v758_v49 = vpop.f32.mrf.mxu1  ;;  %v951_v50 = vpop.f32.mrf.mxu0 }
 0x203   : > { %1101 = vst [vmem:[%s2084_s5 + $0x108] sm:$0xff] %v758_v49  ;;  %1103 = vst [vmem:[%s2084_s5 + $0x118] sm:$0xff] %v951_v50 }
 0x204   : > { %v760_v51 = vpop.f32.mrf.mxu1  ;;  %v953_v52 = vpop.f32.mrf.mxu0 }
 0x205   : > { %1104 = vst [vmem:[%s2084_s5 + $0x120] sm:$0xff] %v760_v51  ;;  %1106 = vst [vmem:[%s2084_s5 + $0x130] sm:$0xff] %v953_v52 }
 0x206   : > { %v762_v53 = vpop.f32.mrf.mxu1  ;;  %v955_v54 = vpop.f32.mrf.mxu0 }
 0x207   : > { %1105 = vst [vmem:[%s2084_s5 + $0x128] sm:$0xff] %v762_v53  ;;  %1107 = vst [vmem:[%s2084_s5 + $0x138] sm:$0xff] %v955_v54 }
 0x208   : > { %v766_v55 = vpop.f32.mrf.mxu1  ;;  %v959_v56 = vpop.f32.mrf.mxu0 }
 0x209   : > { %1108 = vst [vmem:[%s2084_s5 + $0x140] sm:$0xff] %v766_v55  ;;  %1110 = vst [vmem:[%s2084_s5 + $0x150] sm:$0xff] %v959_v56 }
 0x20a   : > { %v768_v57 = vpop.f32.mrf.mxu1  ;;  %v961_v58 = vpop.f32.mrf.mxu0 }
 0x20b   : > { %1109 = vst [vmem:[%s2084_s5 + $0x148] sm:$0xff] %v768_v57  ;;  %1111 = vst [vmem:[%s2084_s5 + $0x158] sm:$0xff] %v961_v58 }
 0x20c   : > { %v770_v59 = vpop.f32.mrf.mxu1  ;;  %v963_v60 = vpop.f32.mrf.mxu0 }
 0x20d   : > { %1112 = vst [vmem:[%s2084_s5 + $0x160] sm:$0xff] %v770_v59  ;;  %1114 = vst [vmem:[%s2084_s5 + $0x170] sm:$0xff] %v963_v60 }
 0x20e   : > { %v772_v61 = vpop.f32.mrf.mxu1  ;;  %v965_v62 = vpop.f32.mrf.mxu0 }
 0x20f   : > { %1113 = vst [vmem:[%s2084_s5 + $0x168] sm:$0xff] %v772_v61  ;;  %1115 = vst [vmem:[%s2084_s5 + $0x178] sm:$0xff] %v965_v62 }
 0x210   : > { %v776_v63 = vpop.f32.mrf.mxu1  ;;  %v969_v0 = vpop.f32.mrf.mxu0 }
 0x211   : > { %1116 = vst [vmem:[%s2084_s5 + $0x180] sm:$0xff] %v776_v63  ;;  %1118 = vst [vmem:[%s2084_s5 + $0x190] sm:$0xff] %v969_v0 }
 0x212   : > { %v778_v1 = vpop.f32.mrf.mxu1  ;;  %v971_v2 = vpop.f32.mrf.mxu0 }
 0x213   : > { %1117 = vst [vmem:[%s2084_s5 + $0x188] sm:$0xff] %v778_v1  ;;  %1119 = vst [vmem:[%s2084_s5 + $0x198] sm:$0xff] %v971_v2 }
 0x214   : > { %v780_v3 = vpop.f32.mrf.mxu1  ;;  %v973_v4 = vpop.f32.mrf.mxu0 }
 0x215   : > { %1120 = vst [vmem:[%s2084_s5 + $0x1a0] sm:$0xff] %v780_v3  ;;  %1122 = vst [vmem:[%s2084_s5 + $0x1b0] sm:$0xff] %v973_v4 }
 0x216   : > { %v782_v5 = vpop.f32.mrf.mxu1  ;;  %v975_v6 = vpop.f32.mrf.mxu0 }
 0x217   : > { %1121 = vst [vmem:[%s2084_s5 + $0x1a8] sm:$0xff] %v782_v5  ;;  %1123 = vst [vmem:[%s2084_s5 + $0x1b8] sm:$0xff] %v975_v6 }
 0x218   : > { %v786_v7 = vpop.f32.mrf.mxu1  ;;  %v979_v8 = vpop.f32.mrf.mxu0 }
 0x219   : > { %1124 = vst [vmem:[%s2084_s5 + $0x1c0] sm:$0xff] %v786_v7  ;;  %1126 = vst [vmem:[%s2084_s5 + $0x1d0] sm:$0xff] %v979_v8 }
 0x21a   : > { %v788_v9 = vpop.f32.mrf.mxu1  ;;  %v981_v10 = vpop.f32.mrf.mxu0 }
 0x21b   : > { %1125 = vst [vmem:[%s2084_s5 + $0x1c8] sm:$0xff] %v788_v9  ;;  %1127 = vst [vmem:[%s2084_s5 + $0x1d8] sm:$0xff] %v981_v10 }
 0x21c   : > { %v790_v11 = vpop.f32.mrf.mxu1  ;;  %v983_v12 = vpop.f32.mrf.mxu0 }
 0x21d   : > { %1128 = vst [vmem:[%s2084_s5 + $0x1e0] sm:$0xff] %v790_v11  ;;  %1130 = vst [vmem:[%s2084_s5 + $0x1f0] sm:$0xff] %v983_v12 }
 0x21e   : > { %v792_v13 = vpop.f32.mrf.mxu1  ;;  %v985_v14 = vpop.f32.mrf.mxu0 }
 0x21f   : > { %1129 = vst [vmem:[%s2084_s5 + $0x1e8] sm:$0xff] %v792_v13  ;;  %1131 = vst [vmem:[%s2084_s5 + $0x1f8] sm:$0xff] %v985_v14 }
 0x220   : > { %v796_v15 = vpop.f32.mrf.mxu1  ;;  %v989_v16 = vpop.f32.mrf.mxu0 }
 0x221   : > { %1132 = vst [vmem:[%s2084_s5 + $0x200] sm:$0xff] %v796_v15  ;;  %1134 = vst [vmem:[%s2084_s5 + $0x210] sm:$0xff] %v989_v16 }
 0x222   : > { %v798_v17 = vpop.f32.mrf.mxu1  ;;  %v991_v18 = vpop.f32.mrf.mxu0 }
 0x223   : > { %1133 = vst [vmem:[%s2084_s5 + $0x208] sm:$0xff] %v798_v17  ;;  %1135 = vst [vmem:[%s2084_s5 + $0x218] sm:$0xff] %v991_v18 }
 0x224   : > { %v800_v19 = vpop.f32.mrf.mxu1  ;;  %v993_v20 = vpop.f32.mrf.mxu0 }
 0x225   : > { %1136 = vst [vmem:[%s2084_s5 + $0x220] sm:$0xff] %v800_v19  ;;  %1138 = vst [vmem:[%s2084_s5 + $0x230] sm:$0xff] %v993_v20 }
 0x226   : > { %v802_v21 = vpop.f32.mrf.mxu1  ;;  %v995_v22 = vpop.f32.mrf.mxu0 }
 0x227   : > { %1137 = vst [vmem:[%s2084_s5 + $0x228] sm:$0xff] %v802_v21  ;;  %1139 = vst [vmem:[%s2084_s5 + $0x238] sm:$0xff] %v995_v22 }
 0x228   : > { %v806_v23 = vpop.f32.mrf.mxu1  ;;  %v999_v24 = vpop.f32.mrf.mxu0 }
 0x229   : > { %1140 = vst [vmem:[%s2084_s5 + $0x240] sm:$0xff] %v806_v23  ;;  %1142 = vst [vmem:[%s2084_s5 + $0x250] sm:$0xff] %v999_v24 }
 0x22a   : > { %v808_v25 = vpop.f32.mrf.mxu1  ;;  %v1001_v26 = vpop.f32.mrf.mxu0 }
 0x22b   : > { %1141 = vst [vmem:[%s2084_s5 + $0x248] sm:$0xff] %v808_v25  ;;  %1143 = vst [vmem:[%s2084_s5 + $0x258] sm:$0xff] %v1001_v26 }
 0x22c   : > { %v810_v27 = vpop.f32.mrf.mxu1  ;;  %v1003_v28 = vpop.f32.mrf.mxu0 }
 0x22d   : > { %1144 = vst [vmem:[%s2084_s5 + $0x260] sm:$0xff] %v810_v27  ;;  %1146 = vst [vmem:[%s2084_s5 + $0x270] sm:$0xff] %v1003_v28 }
 0x22e   : > { %v812_v29 = vpop.f32.mrf.mxu1  ;;  %v1005_v30 = vpop.f32.mrf.mxu0 }
 0x22f   : > { %1145 = vst [vmem:[%s2084_s5 + $0x268] sm:$0xff] %v812_v29  ;;  %1147 = vst [vmem:[%s2084_s5 + $0x278] sm:$0xff] %v1005_v30 }
 0x230   : > { %v816_v31 = vpop.f32.mrf.mxu1  ;;  %v1009_v32 = vpop.f32.mrf.mxu0 }
 0x231   : > { %1148 = vst [vmem:[%s2084_s5 + $0x280] sm:$0xff] %v816_v31  ;;  %1150 = vst [vmem:[%s2084_s5 + $0x290] sm:$0xff] %v1009_v32 }
 0x232   : > { %v818_v33 = vpop.f32.mrf.mxu1  ;;  %v1011_v34 = vpop.f32.mrf.mxu0 }
 0x233   : > { %1149 = vst [vmem:[%s2084_s5 + $0x288] sm:$0xff] %v818_v33  ;;  %1151 = vst [vmem:[%s2084_s5 + $0x298] sm:$0xff] %v1011_v34 }
 0x234   : > { %v820_v35 = vpop.f32.mrf.mxu1  ;;  %v1013_v36 = vpop.f32.mrf.mxu0 }
 0x235   : > { %1152 = vst [vmem:[%s2084_s5 + $0x2a0] sm:$0xff] %v820_v35  ;;  %1154 = vst [vmem:[%s2084_s5 + $0x2b0] sm:$0xff] %v1013_v36 }
 0x236   : > { %v822_v37 = vpop.f32.mrf.mxu1  ;;  %v1015_v38 = vpop.f32.mrf.mxu0 }
 0x237   : > { %1153 = vst [vmem:[%s2084_s5 + $0x2a8] sm:$0xff] %v822_v37  ;;  %1155 = vst [vmem:[%s2084_s5 + $0x2b8] sm:$0xff] %v1015_v38 }
 0x238   : > { %v826_v39 = vpop.f32.mrf.mxu1  ;;  %v1019_v40 = vpop.f32.mrf.mxu0 }
 0x239   : > { %1156 = vst [vmem:[%s2084_s5 + $0x2c0] sm:$0xff] %v826_v39  ;;  %1158 = vst [vmem:[%s2084_s5 + $0x2d0] sm:$0xff] %v1019_v40 }
 0x23a   : > { %v828_v41 = vpop.f32.mrf.mxu1  ;;  %v1021_v42 = vpop.f32.mrf.mxu0 }
 0x23b   : > { %1157 = vst [vmem:[%s2084_s5 + $0x2c8] sm:$0xff] %v828_v41  ;;  %1159 = vst [vmem:[%s2084_s5 + $0x2d8] sm:$0xff] %v1021_v42 }
 0x23c   : > { %v830_v43 = vpop.f32.mrf.mxu1  ;;  %v1023_v44 = vpop.f32.mrf.mxu0 }
 0x23d   : > { %1160 = vst [vmem:[%s2084_s5 + $0x2e0] sm:$0xff] %v830_v43  ;;  %1162 = vst [vmem:[%s2084_s5 + $0x2f0] sm:$0xff] %v1023_v44 }
 0x23e   : > { %v832_v45 = vpop.f32.mrf.mxu1  ;;  %v1025_v46 = vpop.f32.mrf.mxu0 }
 0x23f   : > { %1161 = vst [vmem:[%s2084_s5 + $0x2e8] sm:$0xff] %v832_v45  ;;  %1163 = vst [vmem:[%s2084_s5 + $0x2f8] sm:$0xff] %v1025_v46 }
 0x240   : > { %v836_v47 = vpop.f32.mrf.mxu1  ;;  %v1029_v48 = vpop.f32.mrf.mxu0 }
 0x241   : > { %1164 = vst [vmem:[%s2084_s5 + $0x300] sm:$0xff] %v836_v47  ;;  %1166 = vst [vmem:[%s2084_s5 + $0x310] sm:$0xff] %v1029_v48 }
 0x242   : > { %v838_v49 = vpop.f32.mrf.mxu1  ;;  %v1031_v50 = vpop.f32.mrf.mxu0 }
 0x243   : > { %1165 = vst [vmem:[%s2084_s5 + $0x308] sm:$0xff] %v838_v49  ;;  %1167 = vst [vmem:[%s2084_s5 + $0x318] sm:$0xff] %v1031_v50 }
 0x244   : > { %v840_v51 = vpop.f32.mrf.mxu1  ;;  %v1033_v52 = vpop.f32.mrf.mxu0 }
 0x245   : > { %1168 = vst [vmem:[%s2084_s5 + $0x320] sm:$0xff] %v840_v51  ;;  %1170 = vst [vmem:[%s2084_s5 + $0x330] sm:$0xff] %v1033_v52 }
 0x246   : > { %v842_v53 = vpop.f32.mrf.mxu1  ;;  %v1035_v54 = vpop.f32.mrf.mxu0 }
 0x247   : > { %1169 = vst [vmem:[%s2084_s5 + $0x328] sm:$0xff] %v842_v53  ;;  %1171 = vst [vmem:[%s2084_s5 + $0x338] sm:$0xff] %v1035_v54 }
 0x248   : > { %v846_v55 = vpop.f32.mrf.mxu1  ;;  %v1039_v56 = vpop.f32.mrf.mxu0 }
 0x249   : > { %1172 = vst [vmem:[%s2084_s5 + $0x340] sm:$0xff] %v846_v55  ;;  %1174 = vst [vmem:[%s2084_s5 + $0x350] sm:$0xff] %v1039_v56 }
 0x24a   : > { %v848_v57 = vpop.f32.mrf.mxu1  ;;  %v1041_v58 = vpop.f32.mrf.mxu0 }
 0x24b   : > { %1173 = vst [vmem:[%s2084_s5 + $0x348] sm:$0xff] %v848_v57  ;;  %1175 = vst [vmem:[%s2084_s5 + $0x358] sm:$0xff] %v1041_v58 }
 0x24c   : > { %v850_v59 = vpop.f32.mrf.mxu1  ;;  %v1043_v60 = vpop.f32.mrf.mxu0 }
 0x24d   : > { %1176 = vst [vmem:[%s2084_s5 + $0x360] sm:$0xff] %v850_v59  ;;  %1178 = vst [vmem:[%s2084_s5 + $0x370] sm:$0xff] %v1043_v60 }
 0x24e   : > { %v852_v61 = vpop.f32.mrf.mxu1  ;;  %v1045_v62 = vpop.f32.mrf.mxu0 }
 0x24f   : > { %1177 = vst [vmem:[%s2084_s5 + $0x368] sm:$0xff] %v852_v61  ;;  %1179 = vst [vmem:[%s2084_s5 + $0x378] sm:$0xff] %v1045_v62 }
 0x250   : > { %v856_v63 = vpop.f32.mrf.mxu1  ;;  %v1049_v0 = vpop.f32.mrf.mxu0 }
 0x251   : > { %1180 = vst [vmem:[%s2084_s5 + $0x380] sm:$0xff] %v856_v63  ;;  %1182 = vst [vmem:[%s2084_s5 + $0x390] sm:$0xff] %v1049_v0 }
 0x252   : > { %v858_v1 = vpop.f32.mrf.mxu1  ;;  %v1051_v2 = vpop.f32.mrf.mxu0 }
 0x253   : > { %1181 = vst [vmem:[%s2084_s5 + $0x388] sm:$0xff] %v858_v1  ;;  %1183 = vst [vmem:[%s2084_s5 + $0x398] sm:$0xff] %v1051_v2 }
 0x254   : > { %v860_v3 = vpop.f32.mrf.mxu1  ;;  %v1053_v4 = vpop.f32.mrf.mxu0 }
 0x255   : > { %1184 = vst [vmem:[%s2084_s5 + $0x3a0] sm:$0xff] %v860_v3  ;;  %1186 = vst [vmem:[%s2084_s5 + $0x3b0] sm:$0xff] %v1053_v4 }
 0x256   : > { %v862_v5 = vpop.f32.mrf.mxu1  ;;  %v1055_v6 = vpop.f32.mrf.mxu0 }
 0x257   : > { %1185 = vst [vmem:[%s2084_s5 + $0x3a8] sm:$0xff] %v862_v5  ;;  %1187 = vst [vmem:[%s2084_s5 + $0x3b8] sm:$0xff] %v1055_v6 }
 0x258   : > { %v866_v7 = vpop.f32.mrf.mxu1  ;;  %v1059_v8 = vpop.f32.mrf.mxu0 }
 0x259   : > { %1188 = vst [vmem:[%s2084_s5 + $0x3c0] sm:$0xff] %v866_v7  ;;  %1190 = vst [vmem:[%s2084_s5 + $0x3d0] sm:$0xff] %v1059_v8 }
 0x25a   : > { %v868_v9 = vpop.f32.mrf.mxu1  ;;  %v1061_v10 = vpop.f32.mrf.mxu0 }
 0x25b   : > { %1189 = vst [vmem:[%s2084_s5 + $0x3c8] sm:$0xff] %v868_v9  ;;  %1191 = vst [vmem:[%s2084_s5 + $0x3d8] sm:$0xff] %v1061_v10 }
 0x25c   : > { %v870_v11 = vpop.f32.mrf.mxu1  ;;  %v1063_v12 = vpop.f32.mrf.mxu0 }
 0x25d   : > { %1192 = vst [vmem:[%s2084_s5 + $0x3e0] sm:$0xff] %v870_v11  ;;  %1194 = vst [vmem:[%s2084_s5 + $0x3f0] sm:$0xff] %v1063_v12 }
 0x25e   : > { %v872_v13 = vpop.f32.mrf.mxu1  ;;  %v1065_v14 = vpop.f32.mrf.mxu0 }
 0x25f   : > { %1193 = vst [vmem:[%s2084_s5 + $0x3e8] sm:$0xff] %v872_v13  ;;  %1195 = vst [vmem:[%s2084_s5 + $0x3f8] sm:$0xff] %v1065_v14 }
 0x260   : > { %1690 = shalt.err (!%p1687_p6)
}
 0x261   : > { %s1691_s23 = scalar_lea.hbm %s2216_s8, 16384  ;;  %s1695_s5 = scalar_lea.hbm %s2312_s7, 131072 }
 0x262   : > { %p1692_p9 = scmp.ne.s32.totalorder %s2216_s8, %s1691_s23  ;;  %p1696_p0 = scmp.lt.s32.totalorder %s2216_s8, %s2312_s7 }
 0x263   : > { %p1697_p3 = scmp.lt.s32.totalorder %s1695_s5, %s1691_s23 }
 0x264   : > { %p1693_p10 = pnand %p1692_p9, %p2313_p4 }
 0x265   : > { %p1698_p11 = por %p1697_p3, %p1696_p0 }
 0x266   : > { %p1694_p13 = pneg %p1693_p10 }
 0x268   : > { %p1699_p1 = pnand %p1698_p11, %p1694_p13 }
 0x26a   : > { %1702 = shalt.err (!%p1699_p1)
}
 0x26b   : > { %s1811_s10 = smov 512   ;;  %s1812_s18 = smov 32  }
 0x26c   : > { %1481 = dma.vmem_to_hbm [thread:$0]  (%p2313_p4), %s2218_s19, 16384, %s2216_s8, %s2226_s9, %s1811_s10, %s1811_s10, %s1812_s18  }
 0x26d PF: > { %s2314_s24 = sld [smem:[#allocation11_spill]]  ;;  %p1498_p12 = scmp.ge.s32.totalorder %s1801_s22, 2 }
 0x26e   : > { %s2315_s6 = sld [smem:[#allocation13_spill]] }
 0x273   : > { %s1228_s12 = sand.u32 1, %s2314_s24  }
 0x274   : > { %p2316_p2 = scmp.ne.s32.totalorder %s2315_s6, 0  ;;  %s1229_s27 = scalar_lea.sflag [#allocation4], %s1228_s12 }
 0x276   : > { %p1492_p5 = pnand %p1498_p12, %p2316_p2 }
 0x278   : > { %p1493_p7 = pneg %p1492_p5 }
 0x27a   : > { %1756 = dma.done.wait (%p1493_p7), %s1229_s27, 16384  }
 0x27b   : > { %1758 = vsyncadd (%p1493_p7), %s1229_s27, 4294950912  ;;  %s20_s22 = sadd.s32 1, %s1801_s22   ;;  %s2317_s3 = sld [smem:[#allocation14_spill]] }
 0x27c   : > { %p17_p8 = scmp.ge.s32.totalorder %s20_s22, 10   ;;  %s2318_s12 = smov %s1765_s13 }
 0x27d   : > { %s2319_s13 = smov %s1769_s14  ;;  %s2320_s14 = smov %s1951_s2 }
 0x27e   : > { %s2321_s15 = smov %s1777_s16  ;;  %s2322_s16 = smov %s1781_s17 }
 0x27f   : > { %s2323_s17 = smov %s1944_s4  ;;  %s2324_s18 = smov %s1793_s20 }
 0x280   : > { %s2325_s19 = smov %s1797_s21  ;;  %s2327_s21 = smov %s2333_s11 }
 0x281   : > { %s2326_s20 = smov %s2317_s3  ;;  %19 = sbr.rel (!%p17_p8) target bundleno = 13 (0xd), region = 84 }
 0x286   :  { %1234 = vsyncpa [#allocation3], 1 }
 0x287   :  { %1236 = vsyncpa [#allocation3 + $0x1], 1 }
 0x288   :  { %1237 = vsyncpa [#allocation6], 1 }
 0x289   :  { %1238 = vsyncpa [#allocation4], 1 }
 0x28a   :  { %1240 = vsyncpa [#allocation4 + $0x1], 1 }

</bundles_post_ra>
